<compile_context>
chip_gen: v7x
topology: tpu7x:2x2x1
jax: 0.10.0
libtpu: 0.0.40
codegen_flags: <defaults>
</compile_context>

<pallas_src>
import functools

import jax
import jax.numpy as jnp
from jax.experimental import pallas as pl
from jax.experimental.pallas import tpu as pltpu


def _round_up(n, m):
    return ((n + m - 1) // m) * m


def _lstm_classifier_kernel(x_ref, w_ih_t_ref, w_hh_t_ref, b_ref,
                            w_out_t_ref, b_out_ref, out_ref,
                            h_ref, c_ref, xw_ref,
                            *, seq_len, tile_steps, h_pad):
    """One grid step = one tile of `tile_steps` timesteps.

    Weight layouts (pre-transposed / pre-padded / pre-scaled wrapper-side):
      w_ih_t:  (E, 4*H_pad)      w_hh_t: (H_pad, 4*H_pad)   w_out_t: (H_pad, L)
      b:       (1, 4*H_pad) = b_ih + b_hh (i/f/o columns pre-scaled by 0.5)
    Gate order along the 4*H_pad axis is PyTorch's [i, f, g, o]; each gate
    block is padded to a 128-lane boundary and padded lanes stay exactly zero.
    h/c are carried across grid steps in VMEM scratch.
    """
    i = pl.program_id(0)
    n_tiles = pl.num_programs(0)

    @pl.when(i == 0)
    def _():
        h_ref[...] = jnp.zeros_like(h_ref)   # init_hidden(): h0 = c0 = 0
        c_ref[...] = jnp.zeros_like(c_ref)

    # Bulk input projection for this tile (one MXU matmul), materialized into
    # VMEM scratch so the serial loop below reads single sublane rows (vld)
    # instead of doing per-step sublane extraction from a live vreg value.
    xw_ref[...] = (jnp.dot(x_ref[...], w_ih_t_ref[...],
                           preferred_element_type=jnp.float32)
                   + b_ref[...])

    # Recurrent weight stays resident; possibly bf16 (single-pass MXU).
    w_hh_t = w_hh_t_ref[...]                                   # (H_pad, 4*H_pad)
    tile_start = i * tile_steps

    def step(t, carry):
        h, c = carry
        gates_x = xw_ref[pl.ds(t, 1), :]                       # (1, 4*H_pad) f32
        gates = gates_x + jnp.dot(h.astype(w_hh_t.dtype), w_hh_t,
                                  preferred_element_type=jnp.float32)
        # One EUP transcendental for all four gates: i/f/o pre-activations are
        # pre-scaled by 0.5, so sigmoid(x) = 0.5*tanh(x/2) + 0.5 falls out of
        # the same tanh row; g uses the raw tanh.  All slices are vreg-aligned.
        tg = jnp.tanh(gates)
        i_g = 0.5 * tg[:, 0 * h_pad:1 * h_pad] + 0.5
        f_g = 0.5 * tg[:, 1 * h_pad:2 * h_pad] + 0.5
        g_g = tg[:, 2 * h_pad:3 * h_pad]
        o_g = 0.5 * tg[:, 3 * h_pad:4 * h_pad] + 0.5
        c_new = f_g * c + i_g * g_g
        h_new = o_g * jnp.tanh(c_new)
        # Mask padded timesteps (t beyond the true sequence length): keep h/c.
        valid = (tile_start + t) < seq_len
        h = jnp.where(valid, h_new, h)
        c = jnp.where(valid, c_new, c)
        return h, c

    h, c = jax.lax.fori_loop(0, tile_steps, step, (h_ref[...], c_ref[...]),
                             unroll=min(8, tile_steps))
    h_ref[...] = h
    c_ref[...] = c

    # hidden2label on the last hidden state (== lstm_out[0, -1]).
    @pl.when(i == n_tiles - 1)
    def _():
        out_ref[...] = (jnp.dot(h, w_out_t_ref[...],
                                preferred_element_type=jnp.float32)
                        + b_out_ref[...])


@functools.partial(jax.jit, static_argnames=("bf16_recurrent",
                                              "bf16_input_proj",
                                              "multilabel"))
def lstm_classifier_forward(x, w_ih, w_hh, b_ih, b_hh, w_out, b_out, *,
                            bf16_recurrent=True, bf16_input_proj=False,
                            multilabel=False):
    """x: (S, E) float32.  Weights in PyTorch layout:
         w_ih (4H, E), w_hh (4H, H), b_ih/b_hh (4H,), w_out (L, H), b_out (L,)
    Returns (L,) logits (sigmoid applied if multilabel=True).

    bf16_recurrent: single-pass bf16 MXU matmul for the per-step recurrent
      contribution (f32 accumulation / f32 elementwise).  Fast path; expect
      ~1e-2-level drift vs an all-f32 reference on long documents.
    bf16_input_proj: bf16 x / w_ih for the bulk input projection (halves the
      only O(S) HBM read); also relaxes numerics.
    """
    S, E = x.shape
    H = w_hh.shape[1]
    L = w_out.shape[0]
    H_pad = _round_up(H, 128)          # each gate block on a 128-lane boundary

    # --- wrapper-side weight prep: transpose, fold bias, pre-scale i/f/o by
    # --- 0.5 (sigmoid-via-tanh), zero-pad each gate block to H_pad lanes.
    gate_scale = jnp.array([0.5, 0.5, 1.0, 0.5], jnp.float32)   # [i, f, g, o]

    def pad_gate_cols(w_t):            # (in_dim, 4H) -> (in_dim, 4*H_pad)
        in_dim = w_t.shape[0]
        blocks = w_t.reshape(in_dim, 4, H) * gate_scale[None, :, None]
        blocks = jnp.pad(blocks, ((0, 0), (0, 0), (0, H_pad - H)))
        return blocks.reshape(in_dim, 4 * H_pad)

    w_ih_t = pad_gate_cols(w_ih.T.astype(jnp.float32))          # (E, 4*H_pad)
    w_hh_t = pad_gate_cols(w_hh.T.astype(jnp.float32))          # (H, 4*H_pad)
    w_hh_t = jnp.pad(w_hh_t, ((0, H_pad - H), (0, 0)))          # (H_pad, 4*H_pad)
    b = pad_gate_cols((b_ih + b_hh).astype(jnp.float32).reshape(1, 4 * H))
    w_out_t = jnp.pad(w_out.T.astype(jnp.float32), ((0, H_pad - H), (0, 0)))
    b_out_row = b_out.astype(jnp.float32).reshape(1, L)

    if bf16_recurrent:
        w_hh_t = w_hh_t.astype(jnp.bfloat16)   # single-pass MXU on serial path

    x_in = x.astype(jnp.float32)
    if bf16_input_proj:
        x_in = x_in.astype(jnp.bfloat16)
        w_ih_t = w_ih_t.astype(jnp.bfloat16)

    # --- tile the sequence: grid over S, h/c carried in VMEM scratch.
    TS = min(128, _round_up(S, 8))
    S_pad = _round_up(S, TS)
    if S_pad > S:
        x_in = jnp.pad(x_in, ((0, S_pad - S), (0, 0)))          # masked in-kernel
    n_tiles = S_pad // TS

    # Resident-VMEM estimate (double-buffered inputs + scratch); raise the
    # scoped limit only if a large hidden size actually needs it.
    x_isz = 2 if bf16_input_proj else 4
    w_isz = 2 if bf16_recurrent else 4
    est = (2 * TS * E * x_isz                       # x tile (double-buffered)
           + TS * 4 * H_pad * 4                     # xw scratch
           + 2 * E * 4 * H_pad * x_isz              # w_ih^T
           + 2 * H_pad * 4 * H_pad * w_isz          # w_hh^T
           + 2 * H_pad * L * 4                      # w_out^T
           + 2 * (4 * H_pad + L) * 4                # biases
           + 2 * H_pad * 4)                         # h, c scratch
    cp_kwargs = dict(dimension_semantics=("arbitrary",))
    if est > (12 << 20):
        try:
            cap = pltpu.get_tpu_info().vmem_capacity_bytes
        except Exception:
            cap = 64 << 20
        cp_kwargs["vmem_limit_bytes"] = min(est + (4 << 20), int(cap * 3 // 4))
    compiler_params = pltpu.CompilerParams(**cp_kwargs)

    kernel = functools.partial(_lstm_classifier_kernel,
                               seq_len=S, tile_steps=TS, h_pad=H_pad)

    out = pl.pallas_call(
        kernel,
        out_shape=jax.ShapeDtypeStruct((1, L), jnp.float32),
        grid_spec=pltpu.PrefetchScalarGridSpec(
            num_scalar_prefetch=0,
            grid=(n_tiles,),
            in_specs=[
                pl.BlockSpec((TS, E), lambda i: (i, 0)),             # x tile
                pl.BlockSpec((E, 4 * H_pad), lambda i: (0, 0)),      # w_ih^T
                pl.BlockSpec((H_pad, 4 * H_pad), lambda i: (0, 0)),  # w_hh^T
                pl.BlockSpec((1, 4 * H_pad), lambda i: (0, 0)),      # bias
                pl.BlockSpec((H_pad, L), lambda i: (0, 0)),          # w_out^T
                pl.BlockSpec((1, L), lambda i: (0, 0)),              # b_out
            ],
            out_specs=pl.BlockSpec((1, L), lambda i: (0, 0)),
            scratch_shapes=[
                pltpu.VMEM((1, H_pad), jnp.float32),        # h carry
                pltpu.VMEM((1, H_pad), jnp.float32),        # c carry
                pltpu.VMEM((TS, 4 * H_pad), jnp.float32),   # xw tile
            ],
        ),
        compiler_params=compiler_params,
    )(x_in, w_ih_t, w_hh_t, b, w_out_t, b_out_row)

    logits = out[0]
    if multilabel:
        logits = jax.nn.sigmoid(logits)
    return logits


def _reference_forward(x, w_ih, w_hh, b_ih, b_hh, w_out, b_out):
    """Pure-JAX reference of the same forward pass (for verification)."""
    H = w_hh.shape[1]

    def step(carry, x_t):
        h, c = carry
        gates = x_t @ w_ih.T + b_ih + h @ w_hh.T + b_hh
        i = jax.nn.sigmoid(gates[0 * H:1 * H])
        f = jax.nn.sigmoid(gates[1 * H:2 * H])
        g = jnp.tanh(gates[2 * H:3 * H])
        o = jax.nn.sigmoid(gates[3 * H:4 * H])
        c = f * c + i * g
        h = o * jnp.tanh(c)
        return (h, c), None

    h0 = jnp.zeros((H,), jnp.float32)
    c0 = jnp.zeros((H,), jnp.float32)
    (h_last, _), _ = jax.lax.scan(step, (h0, c0), x)
    return h_last @ w_out.T + b_out


if __name__ == "__main__":
    # Small shapes consistent with the module's forward (batch=1 document):
    E = 32           # embedding_dim
    H = 32           # hidden_dim
    L = 8            # label_dim

    key = jax.random.PRNGKey(0)
    ks = jax.random.split(key, 7)
    bound = 1.0 / jnp.sqrt(H)    # PyTorch LSTM/Linear default init range

    w_ih = jax.random.uniform(ks[1], (4 * H, E), jnp.float32, -bound, bound)
    w_hh = jax.random.uniform(ks[2], (4 * H, H), jnp.float32, -bound, bound)
    b_ih = jax.random.uniform(ks[3], (4 * H,), jnp.float32, -bound, bound)
    b_hh = jax.random.uniform(ks[4], (4 * H,), jnp.float32, -bound, bound)
    w_out = jax.random.uniform(ks[5], (L, H), jnp.float32, -bound, bound)
    b_out = jax.random.uniform(ks[6], (L,), jnp.float32, -bound, bound)
    weights = (w_ih, w_hh, b_ih, b_hh, w_out, b_out)

    # Case 1: short document, strict f32 recurrence -> tight tolerance.
    S = 8
    x = jax.random.normal(ks[0], (S, E), jnp.float32)
    out_f32 = jax.block_until_ready(
        lstm_classifier_forward(x, *weights, bf16_recurrent=False))
    ref = _reference_forward(x, *weights)
    assert out_f32.shape == (L,)
    assert jnp.allclose(out_f32, ref, atol=1e-4, rtol=1e-4), (out_f32, ref)

    # Case 2: default fast path (bf16 recurrent matmul) -> relaxed tolerance.
    out_bf16 = jax.block_until_ready(lstm_classifier_forward(x, *weights))
    assert jnp.allclose(out_bf16, ref, atol=5e-2, rtol=5e-2), (out_bf16, ref)

    # Case 3: longer document exercising multiple S-tiles + padded-step mask.
    S_long = 200
    x_long = jax.random.normal(jax.random.PRNGKey(1), (S_long, E), jnp.float32)
    out_long = jax.block_until_ready(
        lstm_classifier_forward(x_long, *weights, bf16_recurrent=False))
    ref_long = _reference_forward(x_long, *weights)
    assert jnp.allclose(out_long, ref_long, atol=1e-3, rtol=1e-3), (
        out_long, ref_long)

    print("KERNEL_OK")
</pallas_src>

<mosaic_0001>
module attributes {stable_mosaic.version = 11 : i64} {
  func.func @_lstm_classifier_kernel(%arg0: i32, %arg1: memref<8x32xf32, #tpu.memory_space<vmem>>, %arg2: memref<32x512xf32, #tpu.memory_space<vmem>>, %arg3: memref<128x512xf32, #tpu.memory_space<vmem>>, %arg4: memref<1x512xf32, #tpu.memory_space<vmem>>, %arg5: memref<128x8xf32, #tpu.memory_space<vmem>>, %arg6: memref<1x8xf32, #tpu.memory_space<vmem>>, %arg7: memref<1x8xf32, #tpu.memory_space<vmem>>, %arg8: memref<1x128xf32, #tpu.memory_space<vmem>>, %arg9: memref<1x128xf32, #tpu.memory_space<vmem>>, %arg10: memref<8x512xf32, #tpu.memory_space<vmem>>) attributes {dimension_semantics = [#tpu.dimension_semantics<arbitrary>], iteration_bounds = array<i64: 1>, scalar_prefetch = 0 : i64, scratch_operands = 3 : i64, tpu.core_type = #tpu.core_type<tc>, window_params = [{transform_indices = @transform_0, window_bounds = array<i64: 8, 32>}, {pipeline_mode = #tpu.pipeline_mode<synchronous>, transform_indices = @transform_1, window_bounds = array<i64: 32, 512>}, {pipeline_mode = #tpu.pipeline_mode<synchronous>, transform_indices = @transform_2, window_bounds = array<i64: 128, 512>}, {pipeline_mode = #tpu.pipeline_mode<synchronous>, transform_indices = @transform_3, window_bounds = array<i64: 1, 512>}, {pipeline_mode = #tpu.pipeline_mode<synchronous>, transform_indices = @transform_4, window_bounds = array<i64: 128, 8>}, {pipeline_mode = #tpu.pipeline_mode<synchronous>, transform_indices = @transform_5, window_bounds = array<i64: 1, 8>}, {pipeline_mode = #tpu.pipeline_mode<synchronous>, transform_indices = @transform_6, window_bounds = array<i64: 1, 8>}]} {
    %c0_i32 = arith.constant 0 : i32
    %0 = arith.cmpi eq, %arg0, %c0_i32 : i32
    %1 = arith.extui %0 : i1 to i32
    %c0_i32_0 = arith.constant 0 : i32
    %2 = arith.cmpi ne, %1, %c0_i32_0 : i32
    scf.if %2 {
      %cst_94 = arith.constant 0.000000e+00 : f32
      %259 = vector.broadcast %cst_94 : f32 to vector<1x128xf32>
      %c0_95 = arith.constant 0 : index
      %c0_96 = arith.constant 0 : index
      %260 = vector.load %arg8[%c0_95, %c0_96] : memref<1x128xf32, #tpu.memory_space<vmem>>, vector<1x128xf32>
      tpu.vector_store %arg8[%c0_95, %c0_96], %259 {strides = array<i32>} : memref<1x128xf32, #tpu.memory_space<vmem>>, vector<1x128xf32>,
      %cst_97 = arith.constant 0.000000e+00 : f32
      %261 = vector.broadcast %cst_97 : f32 to vector<1x128xf32>
      %c0_98 = arith.constant 0 : index
      %c0_99 = arith.constant 0 : index
      %262 = vector.load %arg9[%c0_98, %c0_99] : memref<1x128xf32, #tpu.memory_space<vmem>>, vector<1x128xf32>
      tpu.vector_store %arg9[%c0_98, %c0_99], %261 {strides = array<i32>} : memref<1x128xf32, #tpu.memory_space<vmem>>, vector<1x128xf32>,
    } else {
    }
    %c0 = arith.constant 0 : index
    %c0_1 = arith.constant 0 : index
    %3 = vector.load %arg1[%c0, %c0_1] : memref<8x32xf32, #tpu.memory_space<vmem>>, vector<8x32xf32>
    %c0_2 = arith.constant 0 : index
    %c0_3 = arith.constant 0 : index
    %4 = vector.load %arg2[%c0_2, %c0_3] : memref<32x512xf32, #tpu.memory_space<vmem>>, vector<32x512xf32>
    %cst = arith.constant dense<0.000000e+00> : vector<8x512xf32>
    %5 = tpu.matmul %3, %4, %cst {dimension_numbers = #tpu.dot_dimension_numbers<[1], [0], [0], [1], [0, 0, 1, 1], [], []>} : vector<8x32xf32>, vector<32x512xf32>, vector<8x512xf32> -> vector<8x512xf32>
    %c0_4 = arith.constant 0 : index
    %c0_5 = arith.constant 0 : index
    %6 = vector.load %arg4[%c0_4, %c0_5] : memref<1x512xf32, #tpu.memory_space<vmem>>, vector<1x512xf32>
    %7 = vector.broadcast %6 : vector<1x512xf32> to vector<8x512xf32>
    %8 = arith.addf %5, %7 : vector<8x512xf32>
    %c0_6 = arith.constant 0 : index
    %c0_7 = arith.constant 0 : index
    %9 = vector.load %arg10[%c0_6, %c0_7] : memref<8x512xf32, #tpu.memory_space<vmem>>, vector<8x512xf32>
    tpu.vector_store %arg10[%c0_6, %c0_7], %8 {strides = array<i32>} : memref<8x512xf32, #tpu.memory_space<vmem>>, vector<8x512xf32>,
    %c0_8 = arith.constant 0 : index
    %c0_9 = arith.constant 0 : index
    %10 = vector.load %arg3[%c0_8, %c0_9] : memref<128x512xf32, #tpu.memory_space<vmem>>, vector<128x512xf32>
    %c8_i32 = arith.constant 8 : i32
    %11 = arith.muli %arg0, %c8_i32 : i32
    %c0_10 = arith.constant 0 : index
    %c0_11 = arith.constant 0 : index
    %12 = vector.load %arg8[%c0_10, %c0_11] : memref<1x128xf32, #tpu.memory_space<vmem>>, vector<1x128xf32>
    %c0_12 = arith.constant 0 : index
    %c0_13 = arith.constant 0 : index
    %13 = vector.load %arg9[%c0_12, %c0_13] : memref<1x128xf32, #tpu.memory_space<vmem>>, vector<1x128xf32>
    %c0_i32_14 = arith.constant 0 : i32
    %14 = arith.index_cast %c0_i32_14 : i32 to index
    %c0_15 = arith.constant 0 : index
    %15 = vector.load %arg10[%14, %c0_15] : memref<8x512xf32, #tpu.memory_space<vmem>>, vector<1x512xf32>
    %cst_16 = arith.constant dense<0.000000e+00> : vector<1x512xf32>
    %16 = tpu.matmul %12, %10, %cst_16 {dimension_numbers = #tpu.dot_dimension_numbers<[1], [0], [0], [1], [0, 0, 1, 1], [], []>} : vector<1x128xf32>, vector<128x512xf32>, vector<1x512xf32> -> vector<1x512xf32>
    %17 = arith.addf %15, %16 : vector<1x512xf32>
    %18 = math.tanh %17 : vector<1x512xf32>
    %19 = vector.extract_strided_slice %18 {offsets = [0, 0], sizes = [1, 128], strides = [1, 1]} : vector<1x512xf32> to vector<1x128xf32>
    %cst_17 = arith.constant 5.000000e-01 : f32
    %20 = vector.broadcast %cst_17 : f32 to vector<1x128xf32>
    %21 = arith.mulf %20, %19 : vector<1x128xf32>
    %cst_18 = arith.constant 5.000000e-01 : f32
    %22 = vector.broadcast %cst_18 : f32 to vector<1x128xf32>
    %23 = arith.addf %21, %22 : vector<1x128xf32>
    %24 = vector.extract_strided_slice %18 {offsets = [0, 128], sizes = [1, 128], strides = [1, 1]} : vector<1x512xf32> to vector<1x128xf32>
    %cst_19 = arith.constant 5.000000e-01 : f32
    %25 = vector.broadcast %cst_19 : f32 to vector<1x128xf32>
    %26 = arith.mulf %25, %24 : vector<1x128xf32>
    %cst_20 = arith.constant 5.000000e-01 : f32
    %27 = vector.broadcast %cst_20 : f32 to vector<1x128xf32>
    %28 = arith.addf %26, %27 : vector<1x128xf32>
    %29 = vector.extract_strided_slice %18 {offsets = [0, 256], sizes = [1, 128], strides = [1, 1]} : vector<1x512xf32> to vector<1x128xf32>
    %30 = vector.extract_strided_slice %18 {offsets = [0, 384], sizes = [1, 128], strides = [1, 1]} : vector<1x512xf32> to vector<1x128xf32>
    %cst_21 = arith.constant 5.000000e-01 : f32
    %31 = vector.broadcast %cst_21 : f32 to vector<1x128xf32>
    %32 = arith.mulf %31, %30 : vector<1x128xf32>
    %cst_22 = arith.constant 5.000000e-01 : f32
    %33 = vector.broadcast %cst_22 : f32 to vector<1x128xf32>
    %34 = arith.addf %32, %33 : vector<1x128xf32>
    %35 = arith.mulf %28, %13 : vector<1x128xf32>
    %36 = arith.mulf %23, %29 : vector<1x128xf32>
    %37 = arith.addf %35, %36 : vector<1x128xf32>
    %38 = math.tanh %37 : vector<1x128xf32>
    %39 = arith.mulf %34, %38 : vector<1x128xf32>
    %40 = arith.addi %11, %c0_i32_14 : i32
    %c8_i32_23 = arith.constant 8 : i32
    %41 = arith.cmpi slt, %40, %c8_i32_23 : i32
    %42 = arith.select %41, %39, %12 : vector<1x128xf32>
    %43 = arith.select %41, %37, %13 : vector<1x128xf32>
    %c1_i32 = arith.constant 1 : i32
    %44 = arith.index_cast %c1_i32 : i32 to index
    %c0_24 = arith.constant 0 : index
    %45 = vector.load %arg10[%44, %c0_24] : memref<8x512xf32, #tpu.memory_space<vmem>>, vector<1x512xf32>
    %cst_25 = arith.constant dense<0.000000e+00> : vector<1x512xf32>
    %46 = tpu.matmul %42, %10, %cst_25 {dimension_numbers = #tpu.dot_dimension_numbers<[1], [0], [0], [1], [0, 0, 1, 1], [], []>} : vector<1x128xf32>, vector<128x512xf32>, vector<1x512xf32> -> vector<1x512xf32>
    %47 = arith.addf %45, %46 : vector<1x512xf32>
    %48 = math.tanh %47 : vector<1x512xf32>
    %49 = vector.extract_strided_slice %48 {offsets = [0, 0], sizes = [1, 128], strides = [1, 1]} : vector<1x512xf32> to vector<1x128xf32>
    %cst_26 = arith.constant 5.000000e-01 : f32
    %50 = vector.broadcast %cst_26 : f32 to vector<1x128xf32>
    %51 = arith.mulf %50, %49 : vector<1x128xf32>
    %cst_27 = arith.constant 5.000000e-01 : f32
    %52 = vector.broadcast %cst_27 : f32 to vector<1x128xf32>
    %53 = arith.addf %51, %52 : vector<1x128xf32>
    %54 = vector.extract_strided_slice %48 {offsets = [0, 128], sizes = [1, 128], strides = [1, 1]} : vector<1x512xf32> to vector<1x128xf32>
    %cst_28 = arith.constant 5.000000e-01 : f32
    %55 = vector.broadcast %cst_28 : f32 to vector<1x128xf32>
    %56 = arith.mulf %55, %54 : vector<1x128xf32>
    %cst_29 = arith.constant 5.000000e-01 : f32
    %57 = vector.broadcast %cst_29 : f32 to vector<1x128xf32>
    %58 = arith.addf %56, %57 : vector<1x128xf32>
    %59 = vector.extract_strided_slice %48 {offsets = [0, 256], sizes = [1, 128], strides = [1, 1]} : vector<1x512xf32> to vector<1x128xf32>
    %60 = vector.extract_strided_slice %48 {offsets = [0, 384], sizes = [1, 128], strides = [1, 1]} : vector<1x512xf32> to vector<1x128xf32>
    %cst_30 = arith.constant 5.000000e-01 : f32
    %61 = vector.broadcast %cst_30 : f32 to vector<1x128xf32>
    %62 = arith.mulf %61, %60 : vector<1x128xf32>
    %cst_31 = arith.constant 5.000000e-01 : f32
    %63 = vector.broadcast %cst_31 : f32 to vector<1x128xf32>
    %64 = arith.addf %62, %63 : vector<1x128xf32>
    %65 = arith.mulf %58, %43 : vector<1x128xf32>
    %66 = arith.mulf %53, %59 : vector<1x128xf32>
    %67 = arith.addf %65, %66 : vector<1x128xf32>
    %68 = math.tanh %67 : vector<1x128xf32>
    %69 = arith.mulf %64, %68 : vector<1x128xf32>
    %70 = arith.addi %11, %c1_i32 : i32
    %c8_i32_32 = arith.constant 8 : i32
    %71 = arith.cmpi slt, %70, %c8_i32_32 : i32
    %72 = arith.select %71, %69, %42 : vector<1x128xf32>
    %73 = arith.select %71, %67, %43 : vector<1x128xf32>
    %c2_i32 = arith.constant 2 : i32
    %74 = arith.index_cast %c2_i32 : i32 to index
    %c0_33 = arith.constant 0 : index
    %75 = vector.load %arg10[%74, %c0_33] : memref<8x512xf32, #tpu.memory_space<vmem>>, vector<1x512xf32>
    %cst_34 = arith.constant dense<0.000000e+00> : vector<1x512xf32>
    %76 = tpu.matmul %72, %10, %cst_34 {dimension_numbers = #tpu.dot_dimension_numbers<[1], [0], [0], [1], [0, 0, 1, 1], [], []>} : vector<1x128xf32>, vector<128x512xf32>, vector<1x512xf32> -> vector<1x512xf32>
    %77 = arith.addf %75, %76 : vector<1x512xf32>
    %78 = math.tanh %77 : vector<1x512xf32>
    %79 = vector.extract_strided_slice %78 {offsets = [0, 0], sizes = [1, 128], strides = [1, 1]} : vector<1x512xf32> to vector<1x128xf32>
    %cst_35 = arith.constant 5.000000e-01 : f32
    %80 = vector.broadcast %cst_35 : f32 to vector<1x128xf32>
    %81 = arith.mulf %80, %79 : vector<1x128xf32>
    %cst_36 = arith.constant 5.000000e-01 : f32
    %82 = vector.broadcast %cst_36 : f32 to vector<1x128xf32>
    %83 = arith.addf %81, %82 : vector<1x128xf32>
    %84 = vector.extract_strided_slice %78 {offsets = [0, 128], sizes = [1, 128], strides = [1, 1]} : vector<1x512xf32> to vector<1x128xf32>
    %cst_37 = arith.constant 5.000000e-01 : f32
    %85 = vector.broadcast %cst_37 : f32 to vector<1x128xf32>
    %86 = arith.mulf %85, %84 : vector<1x128xf32>
    %cst_38 = arith.constant 5.000000e-01 : f32
    %87 = vector.broadcast %cst_38 : f32 to vector<1x128xf32>
    %88 = arith.addf %86, %87 : vector<1x128xf32>
    %89 = vector.extract_strided_slice %78 {offsets = [0, 256], sizes = [1, 128], strides = [1, 1]} : vector<1x512xf32> to vector<1x128xf32>
    %90 = vector.extract_strided_slice %78 {offsets = [0, 384], sizes = [1, 128], strides = [1, 1]} : vector<1x512xf32> to vector<1x128xf32>
    %cst_39 = arith.constant 5.000000e-01 : f32
    %91 = vector.broadcast %cst_39 : f32 to vector<1x128xf32>
    %92 = arith.mulf %91, %90 : vector<1x128xf32>
    %cst_40 = arith.constant 5.000000e-01 : f32
    %93 = vector.broadcast %cst_40 : f32 to vector<1x128xf32>
    %94 = arith.addf %92, %93 : vector<1x128xf32>
    %95 = arith.mulf %88, %73 : vector<1x128xf32>
    %96 = arith.mulf %83, %89 : vector<1x128xf32>
    %97 = arith.addf %95, %96 : vector<1x128xf32>
    %98 = math.tanh %97 : vector<1x128xf32>
    %99 = arith.mulf %94, %98 : vector<1x128xf32>
    %100 = arith.addi %11, %c2_i32 : i32
    %c8_i32_41 = arith.constant 8 : i32
    %101 = arith.cmpi slt, %100, %c8_i32_41 : i32
    %102 = arith.select %101, %99, %72 : vector<1x128xf32>
    %103 = arith.select %101, %97, %73 : vector<1x128xf32>
    %c3_i32 = arith.constant 3 : i32
    %104 = arith.index_cast %c3_i32 : i32 to index
    %c0_42 = arith.constant 0 : index
    %105 = vector.load %arg10[%104, %c0_42] : memref<8x512xf32, #tpu.memory_space<vmem>>, vector<1x512xf32>
    %cst_43 = arith.constant dense<0.000000e+00> : vector<1x512xf32>
    %106 = tpu.matmul %102, %10, %cst_43 {dimension_numbers = #tpu.dot_dimension_numbers<[1], [0], [0], [1], [0, 0, 1, 1], [], []>} : vector<1x128xf32>, vector<128x512xf32>, vector<1x512xf32> -> vector<1x512xf32>
    %107 = arith.addf %105, %106 : vector<1x512xf32>
    %108 = math.tanh %107 : vector<1x512xf32>
    %109 = vector.extract_strided_slice %108 {offsets = [0, 0], sizes = [1, 128], strides = [1, 1]} : vector<1x512xf32> to vector<1x128xf32>
    %cst_44 = arith.constant 5.000000e-01 : f32
    %110 = vector.broadcast %cst_44 : f32 to vector<1x128xf32>
    %111 = arith.mulf %110, %109 : vector<1x128xf32>
    %cst_45 = arith.constant 5.000000e-01 : f32
    %112 = vector.broadcast %cst_45 : f32 to vector<1x128xf32>
    %113 = arith.addf %111, %112 : vector<1x128xf32>
    %114 = vector.extract_strided_slice %108 {offsets = [0, 128], sizes = [1, 128], strides = [1, 1]} : vector<1x512xf32> to vector<1x128xf32>
    %cst_46 = arith.constant 5.000000e-01 : f32
    %115 = vector.broadcast %cst_46 : f32 to vector<1x128xf32>
    %116 = arith.mulf %115, %114 : vector<1x128xf32>
    %cst_47 = arith.constant 5.000000e-01 : f32
    %117 = vector.broadcast %cst_47 : f32 to vector<1x128xf32>
    %118 = arith.addf %116, %117 : vector<1x128xf32>
    %119 = vector.extract_strided_slice %108 {offsets = [0, 256], sizes = [1, 128], strides = [1, 1]} : vector<1x512xf32> to vector<1x128xf32>
    %120 = vector.extract_strided_slice %108 {offsets = [0, 384], sizes = [1, 128], strides = [1, 1]} : vector<1x512xf32> to vector<1x128xf32>
    %cst_48 = arith.constant 5.000000e-01 : f32
    %121 = vector.broadcast %cst_48 : f32 to vector<1x128xf32>
    %122 = arith.mulf %121, %120 : vector<1x128xf32>
    %cst_49 = arith.constant 5.000000e-01 : f32
    %123 = vector.broadcast %cst_49 : f32 to vector<1x128xf32>
    %124 = arith.addf %122, %123 : vector<1x128xf32>
    %125 = arith.mulf %118, %103 : vector<1x128xf32>
    %126 = arith.mulf %113, %119 : vector<1x128xf32>
    %127 = arith.addf %125, %126 : vector<1x128xf32>
    %128 = math.tanh %127 : vector<1x128xf32>
    %129 = arith.mulf %124, %128 : vector<1x128xf32>
    %130 = arith.addi %11, %c3_i32 : i32
    %c8_i32_50 = arith.constant 8 : i32
    %131 = arith.cmpi slt, %130, %c8_i32_50 : i32
    %132 = arith.select %131, %129, %102 : vector<1x128xf32>
    %133 = arith.select %131, %127, %103 : vector<1x128xf32>
    %c4_i32 = arith.constant 4 : i32
    %134 = arith.index_cast %c4_i32 : i32 to index
    %c0_51 = arith.constant 0 : index
    %135 = vector.load %arg10[%134, %c0_51] : memref<8x512xf32, #tpu.memory_space<vmem>>, vector<1x512xf32>
    %cst_52 = arith.constant dense<0.000000e+00> : vector<1x512xf32>
    %136 = tpu.matmul %132, %10, %cst_52 {dimension_numbers = #tpu.dot_dimension_numbers<[1], [0], [0], [1], [0, 0, 1, 1], [], []>} : vector<1x128xf32>, vector<128x512xf32>, vector<1x512xf32> -> vector<1x512xf32>
    %137 = arith.addf %135, %136 : vector<1x512xf32>
    %138 = math.tanh %137 : vector<1x512xf32>
    %139 = vector.extract_strided_slice %138 {offsets = [0, 0], sizes = [1, 128], strides = [1, 1]} : vector<1x512xf32> to vector<1x128xf32>
    %cst_53 = arith.constant 5.000000e-01 : f32
    %140 = vector.broadcast %cst_53 : f32 to vector<1x128xf32>
    %141 = arith.mulf %140, %139 : vector<1x128xf32>
    %cst_54 = arith.constant 5.000000e-01 : f32
    %142 = vector.broadcast %cst_54 : f32 to vector<1x128xf32>
    %143 = arith.addf %141, %142 : vector<1x128xf32>
    %144 = vector.extract_strided_slice %138 {offsets = [0, 128], sizes = [1, 128], strides = [1, 1]} : vector<1x512xf32> to vector<1x128xf32>
    %cst_55 = arith.constant 5.000000e-01 : f32
    %145 = vector.broadcast %cst_55 : f32 to vector<1x128xf32>
    %146 = arith.mulf %145, %144 : vector<1x128xf32>
    %cst_56 = arith.constant 5.000000e-01 : f32
    %147 = vector.broadcast %cst_56 : f32 to vector<1x128xf32>
    %148 = arith.addf %146, %147 : vector<1x128xf32>
    %149 = vector.extract_strided_slice %138 {offsets = [0, 256], sizes = [1, 128], strides = [1, 1]} : vector<1x512xf32> to vector<1x128xf32>
    %150 = vector.extract_strided_slice %138 {offsets = [0, 384], sizes = [1, 128], strides = [1, 1]} : vector<1x512xf32> to vector<1x128xf32>
    %cst_57 = arith.constant 5.000000e-01 : f32
    %151 = vector.broadcast %cst_57 : f32 to vector<1x128xf32>
    %152 = arith.mulf %151, %150 : vector<1x128xf32>
    %cst_58 = arith.constant 5.000000e-01 : f32
    %153 = vector.broadcast %cst_58 : f32 to vector<1x128xf32>
    %154 = arith.addf %152, %153 : vector<1x128xf32>
    %155 = arith.mulf %148, %133 : vector<1x128xf32>
    %156 = arith.mulf %143, %149 : vector<1x128xf32>
    %157 = arith.addf %155, %156 : vector<1x128xf32>
    %158 = math.tanh %157 : vector<1x128xf32>
    %159 = arith.mulf %154, %158 : vector<1x128xf32>
    %160 = arith.addi %11, %c4_i32 : i32
    %c8_i32_59 = arith.constant 8 : i32
    %161 = arith.cmpi slt, %160, %c8_i32_59 : i32
    %162 = arith.select %161, %159, %132 : vector<1x128xf32>
    %163 = arith.select %161, %157, %133 : vector<1x128xf32>
    %c5_i32 = arith.constant 5 : i32
    %164 = arith.index_cast %c5_i32 : i32 to index
    %c0_60 = arith.constant 0 : index
    %165 = vector.load %arg10[%164, %c0_60] : memref<8x512xf32, #tpu.memory_space<vmem>>, vector<1x512xf32>
    %cst_61 = arith.constant dense<0.000000e+00> : vector<1x512xf32>
    %166 = tpu.matmul %162, %10, %cst_61 {dimension_numbers = #tpu.dot_dimension_numbers<[1], [0], [0], [1], [0, 0, 1, 1], [], []>} : vector<1x128xf32>, vector<128x512xf32>, vector<1x512xf32> -> vector<1x512xf32>
    %167 = arith.addf %165, %166 : vector<1x512xf32>
    %168 = math.tanh %167 : vector<1x512xf32>
    %169 = vector.extract_strided_slice %168 {offsets = [0, 0], sizes = [1, 128], strides = [1, 1]} : vector<1x512xf32> to vector<1x128xf32>
    %cst_62 = arith.constant 5.000000e-01 : f32
    %170 = vector.broadcast %cst_62 : f32 to vector<1x128xf32>
    %171 = arith.mulf %170, %169 : vector<1x128xf32>
    %cst_63 = arith.constant 5.000000e-01 : f32
    %172 = vector.broadcast %cst_63 : f32 to vector<1x128xf32>
    %173 = arith.addf %171, %172 : vector<1x128xf32>
    %174 = vector.extract_strided_slice %168 {offsets = [0, 128], sizes = [1, 128], strides = [1, 1]} : vector<1x512xf32> to vector<1x128xf32>
    %cst_64 = arith.constant 5.000000e-01 : f32
    %175 = vector.broadcast %cst_64 : f32 to vector<1x128xf32>
    %176 = arith.mulf %175, %174 : vector<1x128xf32>
    %cst_65 = arith.constant 5.000000e-01 : f32
    %177 = vector.broadcast %cst_65 : f32 to vector<1x128xf32>
    %178 = arith.addf %176, %177 : vector<1x128xf32>
    %179 = vector.extract_strided_slice %168 {offsets = [0, 256], sizes = [1, 128], strides = [1, 1]} : vector<1x512xf32> to vector<1x128xf32>
    %180 = vector.extract_strided_slice %168 {offsets = [0, 384], sizes = [1, 128], strides = [1, 1]} : vector<1x512xf32> to vector<1x128xf32>
    %cst_66 = arith.constant 5.000000e-01 : f32
    %181 = vector.broadcast %cst_66 : f32 to vector<1x128xf32>
    %182 = arith.mulf %181, %180 : vector<1x128xf32>
    %cst_67 = arith.constant 5.000000e-01 : f32
    %183 = vector.broadcast %cst_67 : f32 to vector<1x128xf32>
    %184 = arith.addf %182, %183 : vector<1x128xf32>
    %185 = arith.mulf %178, %163 : vector<1x128xf32>
    %186 = arith.mulf %173, %179 : vector<1x128xf32>
    %187 = arith.addf %185, %186 : vector<1x128xf32>
    %188 = math.tanh %187 : vector<1x128xf32>
    %189 = arith.mulf %184, %188 : vector<1x128xf32>
    %190 = arith.addi %11, %c5_i32 : i32
    %c8_i32_68 = arith.constant 8 : i32
    %191 = arith.cmpi slt, %190, %c8_i32_68 : i32
    %192 = arith.select %191, %189, %162 : vector<1x128xf32>
    %193 = arith.select %191, %187, %163 : vector<1x128xf32>
    %c6_i32 = arith.constant 6 : i32
    %194 = arith.index_cast %c6_i32 : i32 to index
    %c0_69 = arith.constant 0 : index
    %195 = vector.load %arg10[%194, %c0_69] : memref<8x512xf32, #tpu.memory_space<vmem>>, vector<1x512xf32>
    %cst_70 = arith.constant dense<0.000000e+00> : vector<1x512xf32>
    %196 = tpu.matmul %192, %10, %cst_70 {dimension_numbers = #tpu.dot_dimension_numbers<[1], [0], [0], [1], [0, 0, 1, 1], [], []>} : vector<1x128xf32>, vector<128x512xf32>, vector<1x512xf32> -> vector<1x512xf32>
    %197 = arith.addf %195, %196 : vector<1x512xf32>
    %198 = math.tanh %197 : vector<1x512xf32>
    %199 = vector.extract_strided_slice %198 {offsets = [0, 0], sizes = [1, 128], strides = [1, 1]} : vector<1x512xf32> to vector<1x128xf32>
    %cst_71 = arith.constant 5.000000e-01 : f32
    %200 = vector.broadcast %cst_71 : f32 to vector<1x128xf32>
    %201 = arith.mulf %200, %199 : vector<1x128xf32>
    %cst_72 = arith.constant 5.000000e-01 : f32
    %202 = vector.broadcast %cst_72 : f32 to vector<1x128xf32>
    %203 = arith.addf %201, %202 : vector<1x128xf32>
    %204 = vector.extract_strided_slice %198 {offsets = [0, 128], sizes = [1, 128], strides = [1, 1]} : vector<1x512xf32> to vector<1x128xf32>
    %cst_73 = arith.constant 5.000000e-01 : f32
    %205 = vector.broadcast %cst_73 : f32 to vector<1x128xf32>
    %206 = arith.mulf %205, %204 : vector<1x128xf32>
    %cst_74 = arith.constant 5.000000e-01 : f32
    %207 = vector.broadcast %cst_74 : f32 to vector<1x128xf32>
    %208 = arith.addf %206, %207 : vector<1x128xf32>
    %209 = vector.extract_strided_slice %198 {offsets = [0, 256], sizes = [1, 128], strides = [1, 1]} : vector<1x512xf32> to vector<1x128xf32>
    %210 = vector.extract_strided_slice %198 {offsets = [0, 384], sizes = [1, 128], strides = [1, 1]} : vector<1x512xf32> to vector<1x128xf32>
    %cst_75 = arith.constant 5.000000e-01 : f32
    %211 = vector.broadcast %cst_75 : f32 to vector<1x128xf32>
    %212 = arith.mulf %211, %210 : vector<1x128xf32>
    %cst_76 = arith.constant 5.000000e-01 : f32
    %213 = vector.broadcast %cst_76 : f32 to vector<1x128xf32>
    %214 = arith.addf %212, %213 : vector<1x128xf32>
    %215 = arith.mulf %208, %193 : vector<1x128xf32>
    %216 = arith.mulf %203, %209 : vector<1x128xf32>
    %217 = arith.addf %215, %216 : vector<1x128xf32>
    %218 = math.tanh %217 : vector<1x128xf32>
    %219 = arith.mulf %214, %218 : vector<1x128xf32>
    %220 = arith.addi %11, %c6_i32 : i32
    %c8_i32_77 = arith.constant 8 : i32
    %221 = arith.cmpi slt, %220, %c8_i32_77 : i32
    %222 = arith.select %221, %219, %192 : vector<1x128xf32>
    %223 = arith.select %221, %217, %193 : vector<1x128xf32>
    %c7_i32 = arith.constant 7 : i32
    %224 = arith.index_cast %c7_i32 : i32 to index
    %c0_78 = arith.constant 0 : index
    %225 = vector.load %arg10[%224, %c0_78] : memref<8x512xf32, #tpu.memory_space<vmem>>, vector<1x512xf32>
    %cst_79 = arith.constant dense<0.000000e+00> : vector<1x512xf32>
    %226 = tpu.matmul %222, %10, %cst_79 {dimension_numbers = #tpu.dot_dimension_numbers<[1], [0], [0], [1], [0, 0, 1, 1], [], []>} : vector<1x128xf32>, vector<128x512xf32>, vector<1x512xf32> -> vector<1x512xf32>
    %227 = arith.addf %225, %226 : vector<1x512xf32>
    %228 = math.tanh %227 : vector<1x512xf32>
    %229 = vector.extract_strided_slice %228 {offsets = [0, 0], sizes = [1, 128], strides = [1, 1]} : vector<1x512xf32> to vector<1x128xf32>
    %cst_80 = arith.constant 5.000000e-01 : f32
    %230 = vector.broadcast %cst_80 : f32 to vector<1x128xf32>
    %231 = arith.mulf %230, %229 : vector<1x128xf32>
    %cst_81 = arith.constant 5.000000e-01 : f32
    %232 = vector.broadcast %cst_81 : f32 to vector<1x128xf32>
    %233 = arith.addf %231, %232 : vector<1x128xf32>
    %234 = vector.extract_strided_slice %228 {offsets = [0, 128], sizes = [1, 128], strides = [1, 1]} : vector<1x512xf32> to vector<1x128xf32>
    %cst_82 = arith.constant 5.000000e-01 : f32
    %235 = vector.broadcast %cst_82 : f32 to vector<1x128xf32>
    %236 = arith.mulf %235, %234 : vector<1x128xf32>
    %cst_83 = arith.constant 5.000000e-01 : f32
    %237 = vector.broadcast %cst_83 : f32 to vector<1x128xf32>
    %238 = arith.addf %236, %237 : vector<1x128xf32>
    %239 = vector.extract_strided_slice %228 {offsets = [0, 256], sizes = [1, 128], strides = [1, 1]} : vector<1x512xf32> to vector<1x128xf32>
    %240 = vector.extract_strided_slice %228 {offsets = [0, 384], sizes = [1, 128], strides = [1, 1]} : vector<1x512xf32> to vector<1x128xf32>
    %cst_84 = arith.constant 5.000000e-01 : f32
    %241 = vector.broadcast %cst_84 : f32 to vector<1x128xf32>
    %242 = arith.mulf %241, %240 : vector<1x128xf32>
    %cst_85 = arith.constant 5.000000e-01 : f32
    %243 = vector.broadcast %cst_85 : f32 to vector<1x128xf32>
    %244 = arith.addf %242, %243 : vector<1x128xf32>
    %245 = arith.mulf %238, %223 : vector<1x128xf32>
    %246 = arith.mulf %233, %239 : vector<1x128xf32>
    %247 = arith.addf %245, %246 : vector<1x128xf32>
    %248 = math.tanh %247 : vector<1x128xf32>
    %249 = arith.mulf %244, %248 : vector<1x128xf32>
    %250 = arith.addi %11, %c7_i32 : i32
    %c8_i32_86 = arith.constant 8 : i32
    %251 = arith.cmpi slt, %250, %c8_i32_86 : i32
    %252 = arith.select %251, %249, %222 : vector<1x128xf32>
    %253 = arith.select %251, %247, %223 : vector<1x128xf32>
    %c8_i32_87 = arith.constant 8 : i32
    %c0_88 = arith.constant 0 : index
    %c0_89 = arith.constant 0 : index
    %254 = vector.load %arg8[%c0_88, %c0_89] : memref<1x128xf32, #tpu.memory_space<vmem>>, vector<1x128xf32>
    tpu.vector_store %arg8[%c0_88, %c0_89], %252 {strides = array<i32>} : memref<1x128xf32, #tpu.memory_space<vmem>>, vector<1x128xf32>,
    %c0_90 = arith.constant 0 : index
    %c0_91 = arith.constant 0 : index
    %255 = vector.load %arg9[%c0_90, %c0_91] : memref<1x128xf32, #tpu.memory_space<vmem>>, vector<1x128xf32>
    tpu.vector_store %arg9[%c0_90, %c0_91], %253 {strides = array<i32>} : memref<1x128xf32, #tpu.memory_space<vmem>>, vector<1x128xf32>,
    %c0_i32_92 = arith.constant 0 : i32
    %256 = arith.cmpi eq, %arg0, %c0_i32_92 : i32
    %257 = arith.extui %256 : i1 to i32
    %c0_i32_93 = arith.constant 0 : i32
    %258 = arith.cmpi ne, %257, %c0_i32_93 : i32
    scf.if %258 {
      %c0_94 = arith.constant 0 : index
      %c0_95 = arith.constant 0 : index
      %259 = vector.load %arg5[%c0_94, %c0_95] : memref<128x8xf32, #tpu.memory_space<vmem>>, vector<128x8xf32>
      %cst_96 = arith.constant dense<0.000000e+00> : vector<1x8xf32>
      %260 = tpu.matmul %252, %259, %cst_96 {dimension_numbers = #tpu.dot_dimension_numbers<[1], [0], [0], [1], [0, 0, 1, 1], [], []>} : vector<1x128xf32>, vector<128x8xf32>, vector<1x8xf32> -> vector<1x8xf32>
      %c0_97 = arith.constant 0 : index
      %c0_98 = arith.constant 0 : index
      %261 = vector.load %arg6[%c0_97, %c0_98] : memref<1x8xf32, #tpu.memory_space<vmem>>, vector<1x8xf32>
      %262 = arith.addf %260, %261 : vector<1x8xf32>
      %c0_99 = arith.constant 0 : index
      %c0_100 = arith.constant 0 : index
      %263 = vector.load %arg7[%c0_99, %c0_100] : memref<1x8xf32, #tpu.memory_space<vmem>>, vector<1x8xf32>
      tpu.vector_store %arg7[%c0_99, %c0_100], %262 {strides = array<i32>} : memref<1x8xf32, #tpu.memory_space<vmem>>, vector<1x8xf32>,
    } else {
    }
    return
  }
  func.func @transform_0(%arg0: i32) -> (i32, i32) {
    %c0_i32 = arith.constant 0 : i32
    %c0_i32_0 = arith.constant 0 : i32
    return %arg0, %c0_i32 : i32, i32
  }
  func.func @transform_1(%arg0: i32) -> (i32, i32) {
    %c0_i32 = arith.constant 0 : i32
    %c0_i32_0 = arith.constant 0 : i32
    %c0_i32_1 = arith.constant 0 : i32
    return %c0_i32, %c0_i32_0 : i32, i32
  }
  func.func @transform_2(%arg0: i32) -> (i32, i32) {
    %c0_i32 = arith.constant 0 : i32
    %c0_i32_0 = arith.constant 0 : i32
    %c0_i32_1 = arith.constant 0 : i32
    return %c0_i32, %c0_i32_0 : i32, i32
  }
  func.func @transform_3(%arg0: i32) -> (i32, i32) {
    %c0_i32 = arith.constant 0 : i32
    %c0_i32_0 = arith.constant 0 : i32
    %c0_i32_1 = arith.constant 0 : i32
    return %c0_i32, %c0_i32_0 : i32, i32
  }
  func.func @transform_4(%arg0: i32) -> (i32, i32) {
    %c0_i32 = arith.constant 0 : i32
    %c0_i32_0 = arith.constant 0 : i32
    %c0_i32_1 = arith.constant 0 : i32
    return %c0_i32, %c0_i32_0 : i32, i32
  }
  func.func @transform_5(%arg0: i32) -> (i32, i32) {
    %c0_i32 = arith.constant 0 : i32
    %c0_i32_0 = arith.constant 0 : i32
    %c0_i32_1 = arith.constant 0 : i32
    return %c0_i32, %c0_i32_0 : i32, i32
  }
  func.func @transform_6(%arg0: i32) -> (i32, i32) {
    %c0_i32 = arith.constant 0 : i32
    %c0_i32_0 = arith.constant 0 : i32
    %c0_i32_1 = arith.constant 0 : i32
    return %c0_i32, %c0_i32_0 : i32, i32
  }
}

</mosaic_0001>

<bundles_post_ra>
// kernel: lstm_classifier_forward.1
= control target key start
LH: loop header
LB: loop body
LE: loop exit
PB: predicated region body
PF: predicated region fallthrough
CT: control target
= control target key end

     0   :  { %v2659_v7 = vmov 0.0   ;;  %vm69_vm0 = vcmask 261120   ;;  %s3401_s0 = inlined_call_operand.vmem [shape: f32[8,32], index: 0, kind: input, shape index: {}]   ;;  %s3402_s1 = inlined_call_operand.vmem [shape: f32[32,512], index: 1, kind: input, shape index: {}]   ;;  %s3403_s2 = inlined_call_operand.vmem [shape: f32[128,512], index: 2, kind: input, shape index: {}]   ;;  %s3404_s3 = inlined_call_operand.vmem [shape: f32[1,512], index: 3, kind: input, shape index: {}]   ;;  %s3405_s4 = inlined_call_operand.vmem [shape: f32[128,8], index: 4, kind: input, shape index: {}]   ;;  %s3406_s5 = inlined_call_operand.vmem [shape: f32[1,8], index: 5, kind: input, shape index: {}]   ;;  %s3407_s6 = inlined_call_operand.hbm [shape: f32[1,8], index: 6, kind: output, shape index: {}]  }
   0x1   :  { %v32_v0 = vld [vmem:[%s3402_s1 + $0x8] sm:$0xff]  ;;  %v31_v2 = vld [vmem:[%s3402_s1] sm:$0xff]  ;;  %137 = vmatprep.mubr.f32.mxu1 %v2659_v7  ;;  %28 = vst [vmem:[#allocation2] sm:$0x1] %v2659_v7  ;;  %29 = vst [vmem:[#allocation3] sm:$0x1] %v2659_v7  ;;  %351 = vmatprep.mubr.f32.mxu0 %v2659_v7 }
   0x2   :  { %v36_v1 = vld [vmem:[%s3402_s1 + $0x28] sm:$0xff]  ;;  %v35_v4 = vld [vmem:[%s3402_s1 + $0x20] sm:$0xff]  ;;  %v34_v12 = vld [vmem:[%s3402_s1 + $0x18] sm:$0xff] }
   0x3   :  { %v2046_v3 = vpack.c.bf16 %v36_v1, %v32_v0  ;;  %v40_v5 = vld [vmem:[%s3402_s1 + $0x48] sm:$0xff]  ;;  %v2048_v8 = vpack.c.bf16 %v35_v4, %v31_v2  ;;  %v39_v10 = vld [vmem:[%s3402_s1 + $0x40] sm:$0xff]  ;;  %v38_v13 = vld [vmem:[%s3402_s1 + $0x38] sm:$0xff] }
   0x4   :  { %v44_v6 = vld [vmem:[%s3402_s1 + $0x68] sm:$0xff]  ;;  %v43_v11 = vld [vmem:[%s3402_s1 + $0x60] sm:$0xff]  ;;  %v33_v15 = vld [vmem:[%s3402_s1 + $0x10] sm:$0xff]  ;;  %v2054_v17 = vpack.c.bf16 %v38_v13, %v34_v12 }
   0x5   :  { %v2050_v9 = vpack.c.bf16 %v44_v6, %v40_v5  ;;  %2047 = vmatprep.subr.bf16.mxu1 %v2046_v3  ;;  %v2052_v14 = vpack.c.bf16 %v43_v11, %v39_v10  ;;  %v37_v16 = vld [vmem:[%s3402_s1 + $0x30] sm:$0xff]  ;;  %v42_v18 = vld [vmem:[%s3402_s1 + $0x58] sm:$0xff]  ;;  %v220_v20 = vld [vmem:[%s3403_s2 + $0x8] sm:$0xff] }
   0x6   :  { %2049 = vmatpush1.bf16.msra.mxu1 %v2048_v8  ;;  %v46_v19 = vld [vmem:[%s3402_s1 + $0x78] sm:$0xff]  ;;  %v224_v21 = vld [vmem:[%s3403_s2 + $0x28] sm:$0xff]  ;;  %v219_v22 = vld [vmem:[%s3403_s2] sm:$0xff]  ;;  %v2056_v27 = vpack.c.bf16 %v37_v16, %v33_v15 }
   0x7   :  { %2051 = vmatprep.subr.bf16.mxu1 %v2050_v9  ;;  %v223_v23 = vld [vmem:[%s3403_s2 + $0x20] sm:$0xff]  ;;  %v2760_v25 = vpack.c.bf16 %v224_v21, %v220_v20  ;;  %v41_v28 = vld [vmem:[%s3402_s1 + $0x50] sm:$0xff]  ;;  %v228_v29 = vld [vmem:[%s3403_s2 + $0x48] sm:$0xff]  ;;  %v2058_v31 = vpack.c.bf16 %v46_v19, %v42_v18 }
   0x8   :  { %v30_v24 = vld [vmem:[%s3401_s0] sm:$0xff]  ;;  %v2762_v26 = vpack.c.bf16 %v223_v23, %v219_v22  ;;  %v232_v30 = vld [vmem:[%s3403_s2 + $0x68] sm:$0xff]  ;;  %v45_v32 = vld [vmem:[%s3402_s1 + $0x70] sm:$0xff] }
   0x9   :  { %2063 = vmatprep.subr.bf16.mxu0 %v2760_v25  ;;  %v2777_v33 = vpack.c.bf16 %v232_v30, %v228_v29  ;;  %v227_v34 = vld [vmem:[%s3403_s2 + $0x40] sm:$0xff]  ;;  %v222_v36 = vld [vmem:[%s3403_s2 + $0x18] sm:$0xff]  ;;  %v236_v39 = vld [vmem:[%s3403_s2 + $0x88] sm:$0xff]  ;;  %v2060_v42 = vpack.c.bf16 %v45_v32, %v41_v28 }
   0xa   :  { %2053 = vmatpush1.bf16.msra.mxu1 %v2052_v14  ;;  %v231_v35 = vld [vmem:[%s3403_s2 + $0x60] sm:$0xff]  ;;  %2065 = vmatpush1.bf16.msra.mxu0 %v2762_v26  ;;  %v226_v37 = vld [vmem:[%s3403_s2 + $0x38] sm:$0xff]  ;;  %v240_v40 = vld [vmem:[%s3403_s2 + $0xa8] sm:$0xff] }
   0xb   :  { %2055 = vmatprep.subr.bf16.mxu1 %v2054_v17  ;;  %v2792_v38 = vpack.c.bf16 %v231_v35, %v227_v34  ;;  %2067 = vmatprep.subr.bf16.mxu0 %v2777_v33  ;;  %v235_v41 = vld [vmem:[%s3403_s2 + $0x80] sm:$0xff]  ;;  %v2806_v43 = vpack.c.bf16 %v240_v40, %v236_v39  ;;  %v2811_v45 = vpack.c.bf16 %v226_v37, %v222_v36  ;;  %v221_v46 = vld [vmem:[%s3403_s2 + $0x10] sm:$0xff]  ;;  %v244_v48 = vld [vmem:[%s3403_s2 + $0xc8] sm:$0xff] }
   0xc   :  { %v239_v44 = vld [vmem:[%s3403_s2 + $0xa0] sm:$0xff]  ;;  %v225_v47 = vld [vmem:[%s3403_s2 + $0x30] sm:$0xff]  ;;  %v230_v49 = vld [vmem:[%s3403_s2 + $0x58] sm:$0xff] }
   0xd   :  { %1992 = vmatmul.mubr.msk.f32.vlgmr.msra.gmra.mrb[0].mxu1 %vm69_vm0, %v30_v24  ;;  %v234_v50 = vld [vmem:[%s3403_s2 + $0x78] sm:$0xff]  ;;  %v2829_v51 = vpack.c.bf16 %v239_v44, %v235_v41  ;;  %v248_v52 = vld [vmem:[%s3403_s2 + $0xe8] sm:$0xff]  ;;  %v243_v54 = vld [vmem:[%s3403_s2 + $0xc0] sm:$0xff]  ;;  %v2843_v56 = vpack.c.bf16 %v225_v47, %v221_v46 }
   0xe   :  { %2057 = vmatpush1.bf16.msra.mxu1 %v2056_v27  ;;  %208 = vmatprep.mubr.f32.mxu1 %v2659_v7  ;;  %v2835_v53 = vpack.c.bf16 %v248_v52, %v244_v48  ;;  %v247_v55 = vld [vmem:[%s3403_s2 + $0xe0] sm:$0xff]  ;;  %v252_v57 = vld [vmem:[%s3403_s2 + $0x108] sm:$0xff]  ;;  %v2852_v59 = vpack.c.bf16 %v234_v50, %v230_v49  ;;  %v229_v60 = vld [vmem:[%s3403_s2 + $0x50] sm:$0xff] }
   0xf   :  { %2059 = vmatprep.subr.bf16.mxu1 %v2058_v31  ;;  %2069 = vmatpush1.bf16.msra.mxu0 %v2792_v38  ;;  %v256_v58 = vld [vmem:[%s3403_s2 + $0x128] sm:$0xff]  ;;  %v233_v61 = vld [vmem:[%s3403_s2 + $0x70] sm:$0xff]  ;;  %v238_v62 = vld [vmem:[%s3403_s2 + $0x98] sm:$0xff]  ;;  %v2867_v0 = vpack.c.bf16 %v247_v55, %v243_v54 }
  0x10   :  { %2071 = vmatprep.subr.bf16.mxu0 %v2806_v43  ;;  %v242_v63 = vld [vmem:[%s3403_s2 + $0xb8] sm:$0xff]  ;;  %v2871_v1 = vpack.c.bf16 %v256_v58, %v252_v57  ;;  %v251_v2 = vld [vmem:[%s3403_s2 + $0x100] sm:$0xff]  ;;  %v2880_v4 = vpack.c.bf16 %v233_v61, %v229_v60  ;;  %v260_v5 = vld [vmem:[%s3403_s2 + $0x148] sm:$0xff] }
  0x11   :  { %v255_v3 = vld [vmem:[%s3403_s2 + $0x120] sm:$0xff]  ;;  %v264_v6 = vld [vmem:[%s3403_s2 + $0x168] sm:$0xff]  ;;  %v2890_v8 = vpack.c.bf16 %v242_v63, %v238_v62  ;;  %v237_v9 = vld [vmem:[%s3403_s2 + $0x90] sm:$0xff] }
  0x12   :  { %2061 = vmatpush1.bf16.msra.mxu1 %v2060_v42  ;;  %v241_v10 = vld [vmem:[%s3403_s2 + $0xb0] sm:$0xff]  ;;  %v246_v11 = vld [vmem:[%s3403_s2 + $0xd8] sm:$0xff]  ;;  %v2905_v13 = vpack.c.bf16 %v255_v3, %v251_v2  ;;  %v2908_v14 = vpack.c.bf16 %v264_v6, %v260_v5  ;;  %v259_v15 = vld [vmem:[%s3403_s2 + $0x140] sm:$0xff] }
  0x13   :  { %2095 = vmatprep.subr.bf16.mxu1 %v2811_v45  ;;  %2073 = vmatpush1.bf16.msra.mxu0 %v2829_v51  ;;  %v250_v12 = vld [vmem:[%s3403_s2 + $0xf8] sm:$0xff]  ;;  %v263_v16 = vld [vmem:[%s3403_s2 + $0x160] sm:$0xff]  ;;  %v2917_v17 = vpack.c.bf16 %v241_v10, %v237_v9  ;;  %v268_v18 = vld [vmem:[%s3403_s2 + $0x188] sm:$0xff] }
  0x14   :  { %2075 = vmatprep.subr.bf16.mxu0 %v2835_v53  ;;  %v272_v19 = vld [vmem:[%s3403_s2 + $0x1a8] sm:$0xff]  ;;  %v2926_v20 = vpack.c.bf16 %v250_v12, %v246_v11  ;;  %v245_v21 = vld [vmem:[%s3403_s2 + $0xd0] sm:$0xff]  ;;  %v254_v23 = vld [vmem:[%s3403_s2 + $0x118] sm:$0xff]  ;;  %v2941_v27 = vpack.c.bf16 %v263_v16, %v259_v15 }
  0x15   :  { %1993 = vmatmul.mubr.msk.f32.vlgmr.msra.gmra.mrb[2].mxu1 %vm69_vm0, %v30_v24  ;;  %v249_v22 = vld [vmem:[%s3403_s2 + $0xf0] sm:$0xff]  ;;  %v258_v24 = vld [vmem:[%s3403_s2 + $0x138] sm:$0xff]  ;;  %v2944_v28 = vpack.c.bf16 %v272_v19, %v268_v18  ;;  %v267_v29 = vld [vmem:[%s3403_s2 + $0x180] sm:$0xff] }
  0x16   :  { %2097 = vmatpush1.bf16.msra.mxu1 %v2843_v56  ;;  %422 = vmatprep.mubr.f32.mxu1 %v2659_v7  ;;  %v271_v30 = vld [vmem:[%s3403_s2 + $0x1a0] sm:$0xff] }
  0x17   :  { %2099 = vmatprep.subr.bf16.mxu1 %v2852_v59  ;;  %2077 = vmatpush1.bf16.msra.mxu0 %v2867_v0 }
  0x18   :  { %2079 = vmatprep.subr.bf16.mxu0 %v2871_v1 }
  0x1a   :  { %2101 = vmatpush1.bf16.msra.mxu1 %v2880_v4 }
  0x1b   :  { %2103 = vmatprep.subr.bf16.mxu1 %v2890_v8  ;;  %2081 = vmatpush1.bf16.msra.mxu0 %v2905_v13 }
  0x1c   :  { %2083 = vmatprep.subr.bf16.mxu0 %v2908_v14 }
  0x1d   :  { %11 = vsyncpa [#allocation6], 0  ;;  %v2953_v31 = vpack.c.bf16 %v249_v22, %v245_v21  ;;  %v276_v32 = vld [vmem:[%s3403_s2 + $0x1c8] sm:$0xff]  ;;  %v2962_v35 = vpack.c.bf16 %v258_v24, %v254_v23  ;;  %v253_v36 = vld [vmem:[%s3403_s2 + $0x110] sm:$0xff]  ;;  %v2977_v41 = vpack.c.bf16 %v271_v30, %v267_v29  ;;  %v49_v11 = vlaneseq  ;;  %s2663_s10 = smov [#allocation5]  }
  0x1e   :  { %2105 = vmatpush1.bf16.msra.mxu1 %v2917_v17  ;;  %v280_v34 = vld [vmem:[%s3403_s2 + $0x1e8] sm:$0xff]  ;;  %v257_v37 = vld [vmem:[%s3403_s2 + $0x130] sm:$0xff]  ;;  %v262_v39 = vld [vmem:[%s3403_s2 + $0x158] sm:$0xff]  ;;  %vm2662_vm1 = vmmov 0   ;;  %s1984_s11 = sshll.u32 %s2663_s10, 4  ;;  %vm1976_vm2 = vcmask 57344   ;;  %s1985_s11 = int_to_ptr.vmem [resolvable:$true] %s1984_s11 }
  0x1f   :  { %2107 = vmatprep.subr.bf16.mxu1 %v2926_v20  ;;  %2085 = vmatpush1.bf16.msra.mxu0 %v2941_v27  ;;  %v266_v40 = vld [vmem:[%s3403_s2 + $0x178] sm:$0xff]  ;;  %v2980_v42 = vpack.c.bf16 %v280_v34, %v276_v32  ;;  %v275_v44 = vld [vmem:[%s3403_s2 + $0x1c0] sm:$0xff]  ;;  %v2989_v47 = vpack.c.bf16 %v257_v37, %v253_v36  ;;  %v261_v49 = vld [vmem:[%s3403_s2 + $0x150] sm:$0xff]  ;;  %v50_v12 = vshrl.u32 %v49_v11, 7  ;;  %s2635_s12 = scalar_lea.vmem %s1985_s11, 16  ;;  %s2639_s13 = scalar_lea.vmem %s1985_s11, 32 }
  0x20   :  { %2087 = vmatprep.subr.bf16.mxu0 %v2944_v28  ;;  %v279_v46 = vld [vmem:[%s3403_s2 + $0x1e0] sm:$0xff]  ;;  %v2992_v48 = vpack.c.bf16 %v266_v40, %v262_v39  ;;  %v265_v50 = vld [vmem:[%s3403_s2 + $0x170] sm:$0xff]  ;;  %v270_v52 = vld [vmem:[%s3403_s2 + $0x198] sm:$0xff]  ;;  %p2636_p0 = scmp.ne.s32.totalorder %s1985_s11, %s2635_s12  ;;  %p2640_p1 = scmp.lt.s32.totalorder %s1985_s11, %s1985_s11 }
  0x21   :  { %v274_v54 = vld [vmem:[%s3403_s2 + $0x1b8] sm:$0xff]  ;;  %v3007_v55 = vpack.c.bf16 %v279_v46, %v275_v44  ;;  %v3011_v57 = vpack.c.bf16 %v265_v50, %v261_v49  ;;  %v269_v60 = vld [vmem:[%s3403_s2 + $0x190] sm:$0xff]  ;;  %v284_v2 = vld [vmem:[#allocation2] sm:$0x1]  ;;  %v51_v15 = vsub.s32 0, %v50_v12  ;;  %v55_v18 = vsub.s32 1, %v50_v12  ;;  %p2641_p2 = scmp.lt.s32.totalorder %s2639_s13, %s2635_s12 }
  0x22   :  { %2109 = vmatpush1.bf16.msra.mxu1 %v2953_v31  ;;  %v3014_v58 = vpack.c.bf16 %v274_v54, %v270_v52  ;;  %v273_v61 = vld [vmem:[%s3403_s2 + $0x1b0] sm:$0xff]  ;;  %v278_v62 = vld [vmem:[%s3403_s2 + $0x1d8] sm:$0xff]  ;;  %v47_v16 = vld [vmem:[%s3404_s3] sm:$0xf]  ;;  %v59_v29 = vsub.s32 2, %v50_v12  ;;  %v63_v32 = vsub.s32 3, %v50_v12 }
  0x23   :  { %2111 = vmatprep.subr.bf16.mxu1 %v2962_v35  ;;  %2089 = vmatpush1.bf16.msra.mxu0 %v2977_v41  ;;  %v282_v63 = vld [vmem:[%s3403_s2 + $0x1f8] sm:$0xff]  ;;  %v3031_v3 = vpack.c.bf16 %v273_v61, %v269_v60  ;;  %v277_v6 = vld [vmem:[%s3403_s2 + $0x1d0] sm:$0xff]  ;;  %v52_v19 = vrot.slane %v47_v16, %v51_v15  ;;  %v56_v21 = vrot.slane %v47_v16, %v55_v18  ;;  %v2660_v46 = vmov 1966171168   ;;  %p2642_p3 = por %p2641_p2, %p2640_p1 }
  0x24   :  { %2091 = vmatprep.subr.bf16.mxu0 %v2980_v42  ;;  %v3034_v5 = vpack.c.bf16 %v282_v63, %v278_v62  ;;  %v281_v9 = vld [vmem:[%s3403_s2 + $0x1f0] sm:$0xff]  ;;  %v60_v34 = vrot.slane %v47_v16, %v59_v29  ;;  %v64_v36 = vrot.slane %v47_v16, %v63_v32  ;;  %v436_v49 = vunpack.c.l.s4 %v2660_v46 }
  0x25   :  { %v3046_v10 = vpack.c.bf16 %v281_v9, %v277_v6  ;;  %p2643_p4 = pnand %p2642_p3, %p2636_p0 }
  0x26   :  { %2113 = vmatpush1.bf16.msra.mxu1 %v2989_v47  ;;  %v437_v60 = vunpack.c.0.s8 %v436_v49 }
  0x27   :  { %2115 = vmatprep.subr.bf16.mxu1 %v2992_v48  ;;  %2093 = vmatpush1.bf16.msra.mxu0 %v3007_v55 }
  0x28   :  { %2127 = vmatprep.subr.bf16.mxu0 %v2760_v25  ;;  %v3085_v61 = vsub.s32 %v437_v60, %v50_v12  ;;  %v285_v12 = vld [vmem:[#allocation3] sm:$0x1] }
  0x2a   :  { %2117 = vmatpush1.bf16.msra.mxu1 %v3011_v57  ;;  %352 = vmatmul.mubr.f32.vlgmr.msra.gmra.mrb[0].mxu0 %v284_v2 }
  0x2b   :  { %2119 = vmatprep.subr.bf16.mxu1 %v3014_v58  ;;  %2129 = vmatpush1.bf16.msra.mxu0 %v2762_v26 }
  0x2c   :  { %550 = vmatprep.mubr.f32.mxu0 %v2659_v7  ;;  %2131 = vmatprep.subr.bf16.mxu0 %v2777_v33 }
  0x2e   :  { %2121 = vmatpush1.bf16.msra.mxu1 %v3031_v3 }
  0x2f   :  { %2123 = vmatprep.subr.bf16.mxu1 %v3034_v5  ;;  %2133 = vmatpush1.bf16.msra.mxu0 %v2792_v38 }
  0x30   :  { %2135 = vmatprep.subr.bf16.mxu0 %v2806_v43 }
  0x32   :  { %2125 = vmatpush1.bf16.msra.mxu1 %v3046_v10 }
  0x33   :  { %2159 = vmatprep.subr.bf16.mxu1 %v2811_v45  ;;  %2137 = vmatpush1.bf16.msra.mxu0 %v2829_v51 }
  0x34   :  { %2139 = vmatprep.subr.bf16.mxu0 %v2835_v53 }
  0x35   :  { %423 = vmatmul.mubr.f32.vlgmr.msra.gmra.mrb[4].mxu1 %v284_v2 }
  0x36   :  { %2161 = vmatpush1.bf16.msra.mxu1 %v2843_v56  ;;  %621 = vmatprep.mubr.f32.mxu1 %v2659_v7 }
  0x37   :  { %2163 = vmatprep.subr.bf16.mxu1 %v2852_v59  ;;  %2141 = vmatpush1.bf16.msra.mxu0 %v2867_v0 }
  0x38   :  { %2143 = vmatprep.subr.bf16.mxu0 %v2871_v1 }
  0x3a   :  { %2165 = vmatpush1.bf16.msra.mxu1 %v2880_v4 }
  0x3b   :  { %2167 = vmatprep.subr.bf16.mxu1 %v2890_v8  ;;  %2145 = vmatpush1.bf16.msra.mxu0 %v2905_v13 }
  0x3c   :  { %2147 = vmatprep.subr.bf16.mxu0 %v2908_v14 }
  0x3e   :  { %2169 = vmatpush1.bf16.msra.mxu1 %v2917_v17 }
  0x3f   :  { %2171 = vmatprep.subr.bf16.mxu1 %v2926_v20  ;;  %2149 = vmatpush1.bf16.msra.mxu0 %v2941_v27 }
  0x40   :  { %2151 = vmatprep.subr.bf16.mxu0 %v2944_v28 }
  0x42   :  { %2173 = vmatpush1.bf16.msra.mxu1 %v2953_v31 }
  0x43   :  { %2175 = vmatprep.subr.bf16.mxu1 %v2962_v35  ;;  %2153 = vmatpush1.bf16.msra.mxu0 %v2977_v41 }
  0x44   :  { %2155 = vmatprep.subr.bf16.mxu0 %v2980_v42 }
  0x46   :  { %2177 = vmatpush1.bf16.msra.mxu1 %v2989_v47 }
  0x47   :  { %2179 = vmatprep.subr.bf16.mxu1 %v2992_v48  ;;  %2157 = vmatpush1.bf16.msra.mxu0 %v3007_v55 }
  0x48   :  { %2191 = vmatprep.subr.bf16.mxu0 %v2760_v25 }
  0x4a   :  { %2181 = vmatpush1.bf16.msra.mxu1 %v3011_v57 }
  0x4b   :  { %2183 = vmatprep.subr.bf16.mxu1 %v3014_v58 }
  0x4e   :  { %2185 = vmatpush1.bf16.msra.mxu1 %v3031_v3 }
  0x4f   :  { %2187 = vmatprep.subr.bf16.mxu1 %v3034_v5 }
  0x52   :  { %2189 = vmatpush1.bf16.msra.mxu1 %v3046_v10 }
  0x53   :  { %2223 = vmatprep.subr.bf16.mxu1 %v2811_v45 }
  0xe0   :  { %v139_v22 = vpop.f32.mrb[0].mxu1 }
  0xe1   :  { %v140_v23 = vadd.f32 %v139_v22, %v52_v19  ;;  %v141_v24 = vpop.f32.mrb[1].mxu1 }
  0xe2   :  { %v142_v30 = vadd.f32 %v141_v24, %v56_v21 }
  0xe3   :  { %215 = vst [vmem:[#allocation4] sm:$0xff] %v140_v23 }
  0xe4   :  { %216 = vst [vmem:[#allocation4 + $0x8] sm:$0xff] %v142_v30 }
  0xe8   :  { %v210_v37 = vpop.f32.mrb[2].mxu1 }
  0xe9   :  { %v211_v39 = vadd.f32 %v210_v37, %v60_v34  ;;  %v212_v40 = vpop.f32.mrb[3].mxu1 }
  0xea   :  { %v213_v44 = vadd.f32 %v212_v40, %v64_v36 }
  0xeb   :  { %217 = vst [vmem:[#allocation4 + $0x10] sm:$0xff] %v211_v39 }
  0xec   :  { %218 = vst [vmem:[#allocation4 + $0x18] sm:$0xff] %v213_v44 }
  0xf3   :  { %v286_v16 = vld [vmem:[#allocation4] ss:$8 sm:$0xf] }
  0xfd   :  { %v353_v50 = vpop.f32.mrb[0].mxu0 }
  0xfe   :  { %v355_v52 = vpop.f32.mrb[1].mxu0 }
  0xff   :  { %v433_v54 = vcombine.low %v353_v50, %v355_v52 }
 0x101   :  { %v441_v2 = vrot.slane %v433_v54, %v3085_v61 }
 0x108   :  { %v424_v62 = vpop.f32.mrb[4].mxu1 }
 0x109   :  { %v426_v63 = vpop.f32.mrb[5].mxu1 }
 0x10a   :  { %v434_v6 = vcombine.low %v424_v62, %v426_v63 }
 0x10c   :  { %v448_v9 = vrot.slane %v434_v6, %v3085_v61 }
 0x10e   :  { %v449_v11 = vcombine.low %v441_v2, %v448_v9 }
 0x110   :  { %v456_v15 = vrot.slane %v449_v11, %v3085_v61  ;;  %v485_v11 = vld [vmem:[#allocation4 + $0x1] ss:$8 sm:$0xf] }
 0x112   :  { %v458_v18 = vadd.f32 %v456_v15, %v286_v16 }
 0x114   :  { %2603 = vtanh.f32 %v458_v18 }
 0x11e   :  { %v2604_v19 = vpop.eup %2603 }
 0x11f   :  { %v460_v21 = vmul.f32 0.5, %v2604_v19  ;;  %v463_v22 = vrot.slane %v2604_v19, 1  ;;  %v472_v30 = vrot.slane %v2604_v19, 2  ;;  %v467_v37 = vrot.slane %v2604_v19, 3 }
 0x121   :  { %v461_v23 = vadd.f32 0.5, %v460_v21  ;;  %v465_v24 = vmul.f32 0.5, %v463_v22  ;;  %v469_v39 = vmul.f32 0.5, %v467_v37 }
 0x123   :  { %v466_v29 = vadd.f32 0.5, %v465_v24  ;;  %v474_v34 = vmul.f32 %v472_v30, %v461_v23  ;;  %v470_v40 = vadd.f32 0.5, %v469_v39 }
 0x125   :  { %v471_v32 = vmul.f32 %v466_v29, %v285_v12 }
 0x127   :  { %v3090_v36 = vadd.f32 %v474_v34, %v471_v32 }
 0x129   :  { %2605 = vtanh.f32 %v3090_v36 }
 0x133   :  { %v2606_v44 = vpop.eup %2605 }
 0x134   :  { %v477_v46 = vmul.f32 %v2606_v44, %v470_v40 }
 0x136   :  { %551 = vmatmul.mubr.f32.vlgmr.msra.gmra.mrb[2].mxu0 %v477_v46  ;;  %622 = vmatmul.mubr.f32.vlgmr.msra.gmra.mrb[6].mxu1 %v477_v46 }
 0x137   :  { %2193 = vmatpush1.bf16.msra.mxu0 %v2762_v26  ;;  %2225 = vmatpush1.bf16.msra.mxu1 %v2843_v56 }
 0x138   :  { %2195 = vmatprep.subr.bf16.mxu0 %v2777_v33  ;;  %2227 = vmatprep.subr.bf16.mxu1 %v2852_v59 }
 0x139   :  { %750 = vmatprep.mubr.f32.mxu0 %v2659_v7  ;;  %821 = vmatprep.mubr.f32.mxu1 %v2659_v7 }
 0x13b   :  { %2197 = vmatpush1.bf16.msra.mxu0 %v2792_v38  ;;  %2229 = vmatpush1.bf16.msra.mxu1 %v2880_v4 }
 0x13c   :  { %2199 = vmatprep.subr.bf16.mxu0 %v2806_v43  ;;  %2231 = vmatprep.subr.bf16.mxu1 %v2890_v8 }
 0x13f   :  { %2201 = vmatpush1.bf16.msra.mxu0 %v2829_v51  ;;  %2233 = vmatpush1.bf16.msra.mxu1 %v2917_v17 }
 0x140   :  { %2203 = vmatprep.subr.bf16.mxu0 %v2835_v53  ;;  %2235 = vmatprep.subr.bf16.mxu1 %v2926_v20 }
 0x143   :  { %2205 = vmatpush1.bf16.msra.mxu0 %v2867_v0  ;;  %2237 = vmatpush1.bf16.msra.mxu1 %v2953_v31 }
 0x144   :  { %2207 = vmatprep.subr.bf16.mxu0 %v2871_v1  ;;  %2239 = vmatprep.subr.bf16.mxu1 %v2962_v35 }
 0x147   :  { %2209 = vmatpush1.bf16.msra.mxu0 %v2905_v13  ;;  %2241 = vmatpush1.bf16.msra.mxu1 %v2989_v47 }
 0x148   :  { %2211 = vmatprep.subr.bf16.mxu0 %v2908_v14  ;;  %2243 = vmatprep.subr.bf16.mxu1 %v2992_v48 }
 0x14b   :  { %2213 = vmatpush1.bf16.msra.mxu0 %v2941_v27  ;;  %2245 = vmatpush1.bf16.msra.mxu1 %v3011_v57 }
 0x14c   :  { %2215 = vmatprep.subr.bf16.mxu0 %v2944_v28  ;;  %2247 = vmatprep.subr.bf16.mxu1 %v3014_v58 }
 0x14f   :  { %2217 = vmatpush1.bf16.msra.mxu0 %v2977_v41  ;;  %2249 = vmatpush1.bf16.msra.mxu1 %v3031_v3 }
 0x150   :  { %2219 = vmatprep.subr.bf16.mxu0 %v2980_v42  ;;  %2251 = vmatprep.subr.bf16.mxu1 %v3034_v5 }
 0x153   :  { %2221 = vmatpush1.bf16.msra.mxu0 %v3007_v55  ;;  %2253 = vmatpush1.bf16.msra.mxu1 %v3046_v10 }
 0x154   :  { %2255 = vmatprep.subr.bf16.mxu0 %v2760_v25  ;;  %2287 = vmatprep.subr.bf16.mxu1 %v2811_v45 }
 0x209   :  { %v552_v49 = vpop.f32.mrb[2].mxu0  ;;  %v623_v50 = vpop.f32.mrb[6].mxu1 }
 0x20a   :  { %v554_v52 = vpop.f32.mrb[3].mxu0  ;;  %v625_v54 = vpop.f32.mrb[7].mxu1 }
 0x20b   :  { %v632_v60 = vcombine.low %v552_v49, %v554_v52  ;;  %v633_v62 = vcombine.low %v623_v50, %v625_v54 }
 0x20d   :  { %v640_v63 = vrot.slane %v632_v60, %v3085_v61  ;;  %v647_v2 = vrot.slane %v633_v62, %v3085_v61 }
 0x20f   :  { %v648_v6 = vcombine.low %v640_v63, %v647_v2  ;;  %v685_v2 = vld [vmem:[#allocation4 + $0x2] ss:$8 sm:$0xf] }
 0x211   :  { %v655_v9 = vrot.slane %v648_v6, %v3085_v61 }
 0x213   :  { %v657_v15 = vadd.f32 %v655_v9, %v485_v11 }
 0x215   :  { %2607 = vtanh.f32 %v657_v15 }
 0x21f   :  { %v2608_v16 = vpop.eup %2607 }
 0x220   :  { %v659_v18 = vmul.f32 0.5, %v2608_v16  ;;  %v662_v19 = vrot.slane %v2608_v16, 1  ;;  %v671_v24 = vrot.slane %v2608_v16, 2  ;;  %v666_v32 = vrot.slane %v2608_v16, 3 }
 0x222   :  { %v660_v21 = vadd.f32 0.5, %v659_v18  ;;  %v664_v22 = vmul.f32 0.5, %v662_v19  ;;  %v668_v34 = vmul.f32 0.5, %v666_v32 }
 0x224   :  { %v665_v23 = vadd.f32 0.5, %v664_v22  ;;  %v673_v29 = vmul.f32 %v671_v24, %v660_v21  ;;  %v669_v37 = vadd.f32 0.5, %v668_v34 }
 0x226   :  { %v670_v12 = vmul.f32 %v665_v23, %v3090_v36 }
 0x228   :  { %v3131_v30 = vadd.f32 %v673_v29, %v670_v12 }
 0x22a   :  { %2609 = vtanh.f32 %v3131_v30 }
 0x234   :  { %v2610_v39 = vpop.eup %2609 }
 0x235   :  { %v676_v40 = vmul.f32 %v2610_v39, %v669_v37 }
 0x237   :  { %751 = vmatmul.mubr.f32.vlgmr.msra.gmra.mrb[4].mxu0 %v676_v40  ;;  %822 = vmatmul.mubr.f32.vlgmr.msra.gmra.mrb[8].mxu1 %v676_v40 }
 0x238   :  { %2257 = vmatpush1.bf16.msra.mxu0 %v2762_v26  ;;  %2289 = vmatpush1.bf16.msra.mxu1 %v2843_v56 }
 0x239   :  { %2259 = vmatprep.subr.bf16.mxu0 %v2777_v33  ;;  %2291 = vmatprep.subr.bf16.mxu1 %v2852_v59 }
 0x23a   :  { %950 = vmatprep.mubr.f32.mxu0 %v2659_v7  ;;  %1021 = vmatprep.mubr.f32.mxu1 %v2659_v7 }
 0x23c   :  { %2261 = vmatpush1.bf16.msra.mxu0 %v2792_v38  ;;  %2293 = vmatpush1.bf16.msra.mxu1 %v2880_v4 }
 0x23d   :  { %2263 = vmatprep.subr.bf16.mxu0 %v2806_v43  ;;  %2295 = vmatprep.subr.bf16.mxu1 %v2890_v8 }
 0x240   :  { %2265 = vmatpush1.bf16.msra.mxu0 %v2829_v51  ;;  %2297 = vmatpush1.bf16.msra.mxu1 %v2917_v17 }
 0x241   :  { %2267 = vmatprep.subr.bf16.mxu0 %v2835_v53  ;;  %2299 = vmatprep.subr.bf16.mxu1 %v2926_v20 }
 0x244   :  { %2269 = vmatpush1.bf16.msra.mxu0 %v2867_v0  ;;  %2301 = vmatpush1.bf16.msra.mxu1 %v2953_v31 }
 0x245   :  { %2271 = vmatprep.subr.bf16.mxu0 %v2871_v1  ;;  %2303 = vmatprep.subr.bf16.mxu1 %v2962_v35 }
 0x248   :  { %2273 = vmatpush1.bf16.msra.mxu0 %v2905_v13  ;;  %2305 = vmatpush1.bf16.msra.mxu1 %v2989_v47 }
 0x249   :  { %2275 = vmatprep.subr.bf16.mxu0 %v2908_v14  ;;  %2307 = vmatprep.subr.bf16.mxu1 %v2992_v48 }
 0x24c   :  { %2277 = vmatpush1.bf16.msra.mxu0 %v2941_v27  ;;  %2309 = vmatpush1.bf16.msra.mxu1 %v3011_v57 }
 0x24d   :  { %2279 = vmatprep.subr.bf16.mxu0 %v2944_v28  ;;  %2311 = vmatprep.subr.bf16.mxu1 %v3014_v58 }
 0x250   :  { %2281 = vmatpush1.bf16.msra.mxu0 %v2977_v41  ;;  %2313 = vmatpush1.bf16.msra.mxu1 %v3031_v3 }
 0x251   :  { %2283 = vmatprep.subr.bf16.mxu0 %v2980_v42  ;;  %2315 = vmatprep.subr.bf16.mxu1 %v3034_v5 }
 0x254   :  { %2285 = vmatpush1.bf16.msra.mxu0 %v3007_v55  ;;  %2317 = vmatpush1.bf16.msra.mxu1 %v3046_v10 }
 0x255   :  { %2319 = vmatprep.subr.bf16.mxu0 %v2760_v25  ;;  %2351 = vmatprep.subr.bf16.mxu1 %v2811_v45 }
 0x30a   :  { %v752_v36 = vpop.f32.mrb[4].mxu0  ;;  %v823_v44 = vpop.f32.mrb[8].mxu1 }
 0x30b   :  { %v754_v46 = vpop.f32.mrb[5].mxu0  ;;  %v825_v49 = vpop.f32.mrb[9].mxu1 }
 0x30c   :  { %v832_v50 = vcombine.low %v752_v36, %v754_v46  ;;  %v833_v52 = vcombine.low %v823_v44, %v825_v49 }
 0x30e   :  { %v840_v54 = vrot.slane %v832_v50, %v3085_v61  ;;  %v847_v60 = vrot.slane %v833_v52, %v3085_v61 }
 0x310   :  { %v848_v62 = vcombine.low %v840_v54, %v847_v60  ;;  %v885_v60 = vld [vmem:[#allocation4 + $0x3] ss:$8 sm:$0xf] }
 0x312   :  { %v855_v63 = vrot.slane %v848_v62, %v3085_v61 }
 0x314   :  { %v857_v6 = vadd.f32 %v855_v63, %v685_v2 }
 0x316   :  { %2611 = vtanh.f32 %v857_v6 }
 0x320   :  { %v2612_v9 = vpop.eup %2611 }
 0x321   :  { %v859_v11 = vmul.f32 0.5, %v2612_v9  ;;  %v862_v15 = vrot.slane %v2612_v9, 1  ;;  %v871_v21 = vrot.slane %v2612_v9, 2  ;;  %v866_v12 = vrot.slane %v2612_v9, 3 }
 0x323   :  { %v860_v16 = vadd.f32 0.5, %v859_v11  ;;  %v864_v18 = vmul.f32 0.5, %v862_v15  ;;  %v868_v29 = vmul.f32 0.5, %v866_v12 }
 0x325   :  { %v865_v19 = vadd.f32 0.5, %v864_v18  ;;  %v873_v23 = vmul.f32 %v871_v21, %v860_v16  ;;  %v869_v32 = vadd.f32 0.5, %v868_v29 }
 0x327   :  { %v870_v22 = vmul.f32 %v865_v19, %v3131_v30 }
 0x329   :  { %v3172_v24 = vadd.f32 %v873_v23, %v870_v22 }
 0x32b   :  { %2613 = vtanh.f32 %v3172_v24 }
 0x335   :  { %v2614_v34 = vpop.eup %2613 }
 0x336   :  { %v876_v37 = vmul.f32 %v2614_v34, %v869_v32 }
 0x338   :  { %951 = vmatmul.mubr.f32.vlgmr.msra.gmra.mrb[6].mxu0 %v876_v37  ;;  %1022 = vmatmul.mubr.f32.vlgmr.msra.gmra.mrb[10].mxu1 %v876_v37 }
 0x339   :  { %2321 = vmatpush1.bf16.msra.mxu0 %v2762_v26  ;;  %2353 = vmatpush1.bf16.msra.mxu1 %v2843_v56 }
 0x33a   :  { %2323 = vmatprep.subr.bf16.mxu0 %v2777_v33  ;;  %2355 = vmatprep.subr.bf16.mxu1 %v2852_v59 }
 0x33b   :  { %1150 = vmatprep.mubr.f32.mxu0 %v2659_v7  ;;  %1221 = vmatprep.mubr.f32.mxu1 %v2659_v7 }
 0x33d   :  { %2325 = vmatpush1.bf16.msra.mxu0 %v2792_v38  ;;  %2357 = vmatpush1.bf16.msra.mxu1 %v2880_v4 }
 0x33e   :  { %2327 = vmatprep.subr.bf16.mxu0 %v2806_v43  ;;  %2359 = vmatprep.subr.bf16.mxu1 %v2890_v8 }
 0x341   :  { %2329 = vmatpush1.bf16.msra.mxu0 %v2829_v51  ;;  %2361 = vmatpush1.bf16.msra.mxu1 %v2917_v17 }
 0x342   :  { %2331 = vmatprep.subr.bf16.mxu0 %v2835_v53  ;;  %2363 = vmatprep.subr.bf16.mxu1 %v2926_v20 }
 0x345   :  { %2333 = vmatpush1.bf16.msra.mxu0 %v2867_v0  ;;  %2365 = vmatpush1.bf16.msra.mxu1 %v2953_v31 }
 0x346   :  { %2335 = vmatprep.subr.bf16.mxu0 %v2871_v1  ;;  %2367 = vmatprep.subr.bf16.mxu1 %v2962_v35 }
 0x349   :  { %2337 = vmatpush1.bf16.msra.mxu0 %v2905_v13  ;;  %2369 = vmatpush1.bf16.msra.mxu1 %v2989_v47 }
 0x34a   :  { %2339 = vmatprep.subr.bf16.mxu0 %v2908_v14  ;;  %2371 = vmatprep.subr.bf16.mxu1 %v2992_v48 }
 0x34d   :  { %2341 = vmatpush1.bf16.msra.mxu0 %v2941_v27  ;;  %2373 = vmatpush1.bf16.msra.mxu1 %v3011_v57 }
 0x34e   :  { %2343 = vmatprep.subr.bf16.mxu0 %v2944_v28  ;;  %2375 = vmatprep.subr.bf16.mxu1 %v3014_v58 }
 0x351   :  { %2345 = vmatpush1.bf16.msra.mxu0 %v2977_v41  ;;  %2377 = vmatpush1.bf16.msra.mxu1 %v3031_v3 }
 0x352   :  { %2347 = vmatprep.subr.bf16.mxu0 %v2980_v42  ;;  %2379 = vmatprep.subr.bf16.mxu1 %v3034_v5 }
 0x355   :  { %2349 = vmatpush1.bf16.msra.mxu0 %v3007_v55  ;;  %2381 = vmatpush1.bf16.msra.mxu1 %v3046_v10 }
 0x356   :  { %2383 = vmatprep.subr.bf16.mxu0 %v2760_v25  ;;  %2415 = vmatprep.subr.bf16.mxu1 %v2811_v45 }
 0x40b   :  { %v952_v30 = vpop.f32.mrb[6].mxu0  ;;  %v1023_v39 = vpop.f32.mrb[10].mxu1 }
 0x40c   :  { %v954_v40 = vpop.f32.mrb[7].mxu0  ;;  %v1025_v36 = vpop.f32.mrb[11].mxu1 }
 0x40d   :  { %v1032_v44 = vcombine.low %v952_v30, %v954_v40  ;;  %v1033_v46 = vcombine.low %v1023_v39, %v1025_v36 }
 0x40f   :  { %v1040_v49 = vrot.slane %v1032_v44, %v3085_v61  ;;  %v1047_v50 = vrot.slane %v1033_v46, %v3085_v61 }
 0x411   :  { %v1048_v52 = vcombine.low %v1040_v49, %v1047_v50  ;;  %v1085_v50 = vld [vmem:[#allocation4 + $0x4] ss:$8 sm:$0xf] }
 0x413   :  { %v1055_v54 = vrot.slane %v1048_v52, %v3085_v61 }
 0x415   :  { %v1057_v62 = vadd.f32 %v1055_v54, %v885_v60 }
 0x417   :  { %2615 = vtanh.f32 %v1057_v62 }
 0x421   :  { %v2616_v63 = vpop.eup %2615 }
 0x422   :  { %v1059_v2 = vmul.f32 0.5, %v2616_v63  ;;  %v1062_v6 = vrot.slane %v2616_v63, 1  ;;  %v1071_v16 = vrot.slane %v2616_v63, 2  ;;  %v1066_v22 = vrot.slane %v2616_v63, 3 }
 0x424   :  { %v1060_v9 = vadd.f32 0.5, %v1059_v2  ;;  %v1064_v11 = vmul.f32 0.5, %v1062_v6  ;;  %v1068_v23 = vmul.f32 0.5, %v1066_v22 }
 0x426   :  { %v1065_v15 = vadd.f32 0.5, %v1064_v11  ;;  %v1073_v19 = vmul.f32 %v1071_v16, %v1060_v9  ;;  %v1069_v12 = vadd.f32 0.5, %v1068_v23 }
 0x428   :  { %v1070_v18 = vmul.f32 %v1065_v15, %v3172_v24 }
 0x42a   :  { %v3213_v21 = vadd.f32 %v1073_v19, %v1070_v18 }
 0x42c   :  { %2617 = vtanh.f32 %v3213_v21 }
 0x436   :  { %v2618_v29 = vpop.eup %2617 }
 0x437   :  { %v1076_v32 = vmul.f32 %v2618_v29, %v1069_v12 }
 0x439   :  { %1151 = vmatmul.mubr.f32.vlgmr.msra.gmra.mrb[8].mxu0 %v1076_v32  ;;  %1222 = vmatmul.mubr.f32.vlgmr.msra.gmra.mrb[12].mxu1 %v1076_v32 }
 0x43a   :  { %2385 = vmatpush1.bf16.msra.mxu0 %v2762_v26  ;;  %2417 = vmatpush1.bf16.msra.mxu1 %v2843_v56 }
 0x43b   :  { %2387 = vmatprep.subr.bf16.mxu0 %v2777_v33  ;;  %2419 = vmatprep.subr.bf16.mxu1 %v2852_v59 }
 0x43c   :  { %1350 = vmatprep.mubr.f32.mxu0 %v2659_v7  ;;  %1421 = vmatprep.mubr.f32.mxu1 %v2659_v7 }
 0x43e   :  { %2389 = vmatpush1.bf16.msra.mxu0 %v2792_v38  ;;  %2421 = vmatpush1.bf16.msra.mxu1 %v2880_v4 }
 0x43f   :  { %2391 = vmatprep.subr.bf16.mxu0 %v2806_v43  ;;  %2423 = vmatprep.subr.bf16.mxu1 %v2890_v8 }
 0x442   :  { %2393 = vmatpush1.bf16.msra.mxu0 %v2829_v51  ;;  %2425 = vmatpush1.bf16.msra.mxu1 %v2917_v17 }
 0x443   :  { %2395 = vmatprep.subr.bf16.mxu0 %v2835_v53  ;;  %2427 = vmatprep.subr.bf16.mxu1 %v2926_v20 }
 0x446   :  { %2397 = vmatpush1.bf16.msra.mxu0 %v2867_v0  ;;  %2429 = vmatpush1.bf16.msra.mxu1 %v2953_v31 }
 0x447   :  { %2399 = vmatprep.subr.bf16.mxu0 %v2871_v1  ;;  %2431 = vmatprep.subr.bf16.mxu1 %v2962_v35 }
 0x44a   :  { %2401 = vmatpush1.bf16.msra.mxu0 %v2905_v13  ;;  %2433 = vmatpush1.bf16.msra.mxu1 %v2989_v47 }
 0x44b   :  { %2403 = vmatprep.subr.bf16.mxu0 %v2908_v14  ;;  %2435 = vmatprep.subr.bf16.mxu1 %v2992_v48 }
 0x44e   :  { %2405 = vmatpush1.bf16.msra.mxu0 %v2941_v27  ;;  %2437 = vmatpush1.bf16.msra.mxu1 %v3011_v57 }
 0x44f   :  { %2407 = vmatprep.subr.bf16.mxu0 %v2944_v28  ;;  %2439 = vmatprep.subr.bf16.mxu1 %v3014_v58 }
 0x452   :  { %2409 = vmatpush1.bf16.msra.mxu0 %v2977_v41  ;;  %2441 = vmatpush1.bf16.msra.mxu1 %v3031_v3 }
 0x453   :  { %2411 = vmatprep.subr.bf16.mxu0 %v2980_v42  ;;  %2443 = vmatprep.subr.bf16.mxu1 %v3034_v5 }
 0x456   :  { %2413 = vmatpush1.bf16.msra.mxu0 %v3007_v55  ;;  %2445 = vmatpush1.bf16.msra.mxu1 %v3046_v10 }
 0x457   :  { %2447 = vmatprep.subr.bf16.mxu0 %v2760_v25  ;;  %2479 = vmatprep.subr.bf16.mxu1 %v2811_v45 }
 0x50c   :  { %v1152_v24 = vpop.f32.mrb[8].mxu0  ;;  %v1223_v34 = vpop.f32.mrb[12].mxu1 }
 0x50d   :  { %v1154_v37 = vpop.f32.mrb[9].mxu0  ;;  %v1225_v30 = vpop.f32.mrb[13].mxu1 }
 0x50e   :  { %v1232_v39 = vcombine.low %v1152_v24, %v1154_v37  ;;  %v1233_v40 = vcombine.low %v1223_v34, %v1225_v30 }
 0x510   :  { %v1240_v36 = vrot.slane %v1232_v39, %v3085_v61  ;;  %v1247_v44 = vrot.slane %v1233_v40, %v3085_v61 }
 0x512   :  { %v1248_v46 = vcombine.low %v1240_v36, %v1247_v44  ;;  %v1285_v44 = vld [vmem:[#allocation4 + $0x5] ss:$8 sm:$0xf] }
 0x514   :  { %v1255_v49 = vrot.slane %v1248_v46, %v3085_v61 }
 0x516   :  { %v1257_v52 = vadd.f32 %v1255_v49, %v1085_v50 }
 0x518   :  { %2619 = vtanh.f32 %v1257_v52 }
 0x522   :  { %v2620_v54 = vpop.eup %2619 }
 0x523   :  { %v1259_v60 = vmul.f32 0.5, %v2620_v54  ;;  %v1262_v62 = vrot.slane %v2620_v54, 1  ;;  %v1271_v9 = vrot.slane %v2620_v54, 2  ;;  %v1266_v18 = vrot.slane %v2620_v54, 3 }
 0x525   :  { %v1260_v63 = vadd.f32 0.5, %v1259_v60  ;;  %v1264_v2 = vmul.f32 0.5, %v1262_v62  ;;  %v1268_v19 = vmul.f32 0.5, %v1266_v18 }
 0x527   :  { %v1265_v6 = vadd.f32 0.5, %v1264_v2  ;;  %v1273_v15 = vmul.f32 %v1271_v9, %v1260_v63  ;;  %v1269_v22 = vadd.f32 0.5, %v1268_v19 }
 0x529   :  { %v1270_v11 = vmul.f32 %v1265_v6, %v3213_v21 }
 0x52b   :  { %v3254_v16 = vadd.f32 %v1273_v15, %v1270_v11 }
 0x52d   :  { %2621 = vtanh.f32 %v3254_v16 }
 0x537   :  { %v2622_v23 = vpop.eup %2621 }
 0x538   :  { %v1276_v12 = vmul.f32 %v2622_v23, %v1269_v22  ;;  %v1892_v22 = vld [vmem:[%s3405_s4 + $0x18] sm:$0xff] }
 0x53a   :  { %1351 = vmatmul.mubr.f32.vlgmr.msra.gmra.mrb[10].mxu0 %v1276_v12  ;;  %1422 = vmatmul.mubr.f32.vlgmr.msra.gmra.mrb[14].mxu1 %v1276_v12  ;;  %v1893_v12 = vld [vmem:[%s3405_s4 + $0x20] sm:$0xff] }
 0x53b   :  { %2449 = vmatpush1.bf16.msra.mxu0 %v2762_v26  ;;  %2481 = vmatpush1.bf16.msra.mxu1 %v2843_v56 }
 0x53c   :  { %2451 = vmatprep.subr.bf16.mxu0 %v2777_v33  ;;  %2483 = vmatprep.subr.bf16.mxu1 %v2852_v59 }
 0x53d   :  { %1550 = vmatprep.mubr.f32.mxu0 %v2659_v7  ;;  %1621 = vmatprep.mubr.f32.mxu1 %v2659_v7 }
 0x53f   :  { %2453 = vmatpush1.bf16.msra.mxu0 %v2792_v38  ;;  %2485 = vmatpush1.bf16.msra.mxu1 %v2880_v4 }
 0x540   :  { %2455 = vmatprep.subr.bf16.mxu0 %v2806_v43  ;;  %2487 = vmatprep.subr.bf16.mxu1 %v2890_v8 }
 0x543   :  { %2457 = vmatpush1.bf16.msra.mxu0 %v2829_v51  ;;  %2489 = vmatpush1.bf16.msra.mxu1 %v2917_v17 }
 0x544   :  { %2459 = vmatprep.subr.bf16.mxu0 %v2835_v53  ;;  %2491 = vmatprep.subr.bf16.mxu1 %v2926_v20 }
 0x547   :  { %2461 = vmatpush1.bf16.msra.mxu0 %v2867_v0  ;;  %2493 = vmatpush1.bf16.msra.mxu1 %v2953_v31 }
 0x548   :  { %2463 = vmatprep.subr.bf16.mxu0 %v2871_v1  ;;  %2495 = vmatprep.subr.bf16.mxu1 %v2962_v35 }
 0x54b   :  { %2465 = vmatpush1.bf16.msra.mxu0 %v2905_v13  ;;  %2497 = vmatpush1.bf16.msra.mxu1 %v2989_v47 }
 0x54c   :  { %2467 = vmatprep.subr.bf16.mxu0 %v2908_v14  ;;  %2499 = vmatprep.subr.bf16.mxu1 %v2992_v48 }
 0x54f   :  { %2469 = vmatpush1.bf16.msra.mxu0 %v2941_v27  ;;  %2501 = vmatpush1.bf16.msra.mxu1 %v3011_v57 }
 0x550   :  { %2471 = vmatprep.subr.bf16.mxu0 %v2944_v28  ;;  %2503 = vmatprep.subr.bf16.mxu1 %v3014_v58 }
 0x553   :  { %2473 = vmatpush1.bf16.msra.mxu0 %v2977_v41  ;;  %2505 = vmatpush1.bf16.msra.mxu1 %v3031_v3 }
 0x554   :  { %2475 = vmatprep.subr.bf16.mxu0 %v2980_v42  ;;  %2507 = vmatprep.subr.bf16.mxu1 %v3034_v5 }
 0x557   :  { %2477 = vmatpush1.bf16.msra.mxu0 %v3007_v55  ;;  %2509 = vmatpush1.bf16.msra.mxu1 %v3046_v10 }
 0x558   :  { %2511 = vmatprep.subr.bf16.mxu0 %v2760_v25  ;;  %2543 = vmatprep.subr.bf16.mxu1 %v2811_v45 }
 0x60d   :  { %v1352_v21 = vpop.f32.mrb[10].mxu0  ;;  %v1423_v29 = vpop.f32.mrb[14].mxu1 }
 0x60e   :  { %v1354_v32 = vpop.f32.mrb[11].mxu0  ;;  %v1425_v24 = vpop.f32.mrb[15].mxu1 }
 0x60f   :  { %v1432_v34 = vcombine.low %v1352_v21, %v1354_v32  ;;  %v1433_v37 = vcombine.low %v1423_v29, %v1425_v24  ;;  %v1894_v21 = vld [vmem:[%s3405_s4 + $0x28] sm:$0xff]  ;;  %v1895_v32 = vld [vmem:[%s3405_s4 + $0x30] sm:$0xff] }
 0x610   :  { %v2581_v29 = vpack.c.bf16 %v1894_v21, %v1893_v12 }
 0x611   :  { %v1440_v30 = vrot.slane %v1432_v34, %v3085_v61  ;;  %v1447_v39 = vrot.slane %v1433_v37, %v3085_v61  ;;  %v1897_v34 = vld [vmem:[%s3405_s4 + $0x40] sm:$0xff]  ;;  %v1898_v37 = vld [vmem:[%s3405_s4 + $0x48] sm:$0xff] }
 0x613   :  { %v1448_v40 = vcombine.low %v1440_v30, %v1447_v39  ;;  %v2587_v30 = vpack.c.bf16 %v1898_v37, %v1897_v34  ;;  %v1899_v39 = vld [vmem:[%s3405_s4 + $0x50] sm:$0xff] }
 0x615   :  { %v1455_v36 = vrot.slane %v1448_v40, %v3085_v61  ;;  %v1900_v40 = vld [vmem:[%s3405_s4 + $0x58] sm:$0xff] }
 0x617   :  { %v1457_v46 = vadd.f32 %v1455_v36, %v1285_v44  ;;  %v2590_v36 = vpack.c.bf16 %v1900_v40, %v1899_v39  ;;  %v1901_v44 = vld [vmem:[%s3405_s4 + $0x60] sm:$0xff] }
 0x619   :  { %2623 = vtanh.f32 %v1457_v46  ;;  %v1902_v46 = vld [vmem:[%s3405_s4 + $0x68] sm:$0xff] }
 0x623   :  { %v2624_v49 = vpop.eup %2623 }
 0x624   :  { %v1459_v25 = vmul.f32 0.5, %v2624_v49  ;;  %v1462_v50 = vrot.slane %v2624_v49, 1  ;;  %v1471_v60 = vrot.slane %v2624_v49, 2  ;;  %v1466_v6 = vrot.slane %v2624_v49, 3 }
 0x625   :  { %v2593_v49 = vpack.c.bf16 %v1902_v46, %v1901_v44 }
 0x626   :  { %v1460_v45 = vadd.f32 0.5, %v1459_v25  ;;  %v1464_v52 = vmul.f32 0.5, %v1462_v50  ;;  %v1468_v9 = vmul.f32 0.5, %v1466_v6  ;;  %v1903_v25 = vld [vmem:[%s3405_s4 + $0x70] sm:$0xff]  ;;  %v1904_v50 = vld [vmem:[%s3405_s4 + $0x78] sm:$0xff] }
 0x628   :  { %v1465_v54 = vadd.f32 0.5, %v1464_v52  ;;  %v1473_v63 = vmul.f32 %v1471_v60, %v1460_v45  ;;  %v1469_v11 = vadd.f32 0.5, %v1468_v9  ;;  %v2596_v45 = vpack.c.bf16 %v1904_v50, %v1903_v25 }
 0x62a   :  { %v1470_v62 = vmul.f32 %v1465_v54, %v3254_v16  ;;  %v2661_v16 = vmov 0.0|0.0  }
 0x62c   :  { %v1474_v2 = vadd.f32 %v1473_v63, %v1470_v62 }
 0x62e   :  { %2625 = vtanh.f32 %v1474_v2 }
 0x638   :  { %v2626_v15 = vpop.eup %2625 }
 0x639   :  { %v1476_v18 = vmul.f32 %v2626_v15, %v1469_v11 }
 0x63b   :  { %1551 = vmatmul.mubr.f32.vlgmr.msra.gmra.mrb[12].mxu0 %v1476_v18  ;;  %1622 = vmatmul.mubr.f32.vlgmr.msra.gmra.mrb[16].mxu1 %v1476_v18  ;;  %v1685_v18 = vld [vmem:[#allocation4 + $0x7] ss:$8 sm:$0xf] }
 0x63c   :  { %2513 = vmatpush1.bf16.msra.mxu0 %v2762_v26  ;;  %2545 = vmatpush1.bf16.msra.mxu1 %v2843_v56 }
 0x63d   :  { %2515 = vmatprep.subr.bf16.mxu0 %v2777_v33  ;;  %2547 = vmatprep.subr.bf16.mxu1 %v2852_v59 }
 0x63e   :  { %1750 = vmatprep.mubr.f32.mxu0 %v2659_v7  ;;  %1821 = vmatprep.mubr.f32.mxu1 %v2659_v7 }
 0x640   :  { %2517 = vmatpush1.bf16.msra.mxu0 %v2792_v38  ;;  %2549 = vmatpush1.bf16.msra.mxu1 %v2880_v4  ;;  %v1485_v4 = vld [vmem:[#allocation4 + $0x6] ss:$8 sm:$0xf] }
 0x641   :  { %2519 = vmatprep.subr.bf16.mxu0 %v2806_v43  ;;  %2551 = vmatprep.subr.bf16.mxu1 %v2890_v8 }
 0x644   :  { %2521 = vmatpush1.bf16.msra.mxu0 %v2829_v51  ;;  %2553 = vmatpush1.bf16.msra.mxu1 %v2917_v17 }
 0x645   :  { %2523 = vmatprep.subr.bf16.mxu0 %v2835_v53  ;;  %2555 = vmatprep.subr.bf16.mxu1 %v2926_v20 }
 0x648   :  { %2525 = vmatpush1.bf16.msra.mxu0 %v2867_v0  ;;  %2557 = vmatpush1.bf16.msra.mxu1 %v2953_v31 }
 0x649   :  { %2527 = vmatprep.subr.bf16.mxu0 %v2871_v1  ;;  %2559 = vmatprep.subr.bf16.mxu1 %v2962_v35 }
 0x64c   :  { %2529 = vmatpush1.bf16.msra.mxu0 %v2905_v13  ;;  %2561 = vmatpush1.bf16.msra.mxu1 %v2989_v47 }
 0x64d   :  { %2531 = vmatprep.subr.bf16.mxu0 %v2908_v14  ;;  %2563 = vmatprep.subr.bf16.mxu1 %v2992_v48 }
 0x650   :  { %2533 = vmatpush1.bf16.msra.mxu0 %v2941_v27  ;;  %2565 = vmatpush1.bf16.msra.mxu1 %v3011_v57 }
 0x651   :  { %2535 = vmatprep.subr.bf16.mxu0 %v2944_v28  ;;  %2567 = vmatprep.subr.bf16.mxu1 %v3014_v58 }
 0x654   :  { %2537 = vmatpush1.bf16.msra.mxu0 %v2977_v41  ;;  %2569 = vmatpush1.bf16.msra.mxu1 %v3031_v3  ;;  %v1889_v3 = vld [vmem:[%s3405_s4] sm:$0xff] }
 0x655   :  { %2539 = vmatprep.subr.bf16.mxu0 %v2980_v42  ;;  %2571 = vmatprep.subr.bf16.mxu1 %v3034_v5  ;;  %v1890_v5 = vld [vmem:[%s3405_s4 + $0x8] sm:$0xff] }
 0x656   :  { %v2575_v19 = vpack.c.bf16 %v1890_v5, %v1889_v3 }
 0x658   :  { %2541 = vmatpush1.bf16.msra.mxu0 %v3007_v55  ;;  %2573 = vmatpush1.bf16.msra.mxu1 %v3046_v10  ;;  %v1891_v10 = vld [vmem:[%s3405_s4 + $0x10] sm:$0xff] }
 0x659   :  { %2574 = vmatprep.subr.bf16.mxu0 %v2661_v16  ;;  %v2578_v23 = vpack.c.bf16 %v1892_v22, %v1891_v10 }
 0x70e   :  { %v1552_v26 = vpop.f32.mrb[12].mxu0  ;;  %v1623_v33 = vpop.f32.mrb[16].mxu1 }
 0x70f   :  { %v1554_v38 = vpop.f32.mrb[13].mxu0  ;;  %v1625_v43 = vpop.f32.mrb[17].mxu1 }
 0x710   :  { %v1632_v51 = vcombine.low %v1552_v26, %v1554_v38  ;;  %v1633_v53 = vcombine.low %v1623_v33, %v1625_v43 }
 0x712   :  { %v1640_v56 = vrot.slane %v1632_v51, %v3085_v61  ;;  %v1647_v59 = vrot.slane %v1633_v53, %v3085_v61 }
 0x714   :  { %v1648_v0 = vcombine.low %v1640_v56, %v1647_v59 }
 0x716   :  { %v1655_v1 = vrot.slane %v1648_v0, %v3085_v61 }
 0x718   :  { %v1657_v8 = vadd.f32 %v1655_v1, %v1485_v4 }
 0x71a   :  { %2627 = vtanh.f32 %v1657_v8 }
 0x724   :  { %v2628_v13 = vpop.eup %2627 }
 0x725   :  { %v1659_v14 = vmul.f32 0.5, %v2628_v13  ;;  %v1662_v17 = vrot.slane %v2628_v13, 1  ;;  %v1671_v31 = vrot.slane %v2628_v13, 2  ;;  %v1666_v47 = vrot.slane %v2628_v13, 3 }
 0x727   :  { %v1660_v20 = vadd.f32 0.5, %v1659_v14  ;;  %v1664_v27 = vmul.f32 0.5, %v1662_v17  ;;  %v1668_v48 = vmul.f32 0.5, %v1666_v47 }
 0x729   :  { %v1665_v28 = vadd.f32 0.5, %v1664_v27  ;;  %v1673_v41 = vmul.f32 %v1671_v31, %v1660_v20  ;;  %v1669_v55 = vadd.f32 0.5, %v1668_v48  ;;  %v1905_v20 = vld [vmem:[%s3406_s5] sm:$0x1] }
 0x72b   :  { %v1670_v35 = vmul.f32 %v1665_v28, %v1474_v2 }
 0x72d   :  { %v3330_v42 = vadd.f32 %v1673_v41, %v1670_v35 }
 0x72f   :  { %2629 = vtanh.f32 %v3330_v42 }
 0x739   :  { %v2630_v57 = vpop.eup %2629 }
 0x73a   :  { %v1676_v58 = vmul.f32 %v2630_v57, %v1669_v55 }
 0x73c   :  { %1751 = vmatmul.mubr.f32.vlgmr.msra.gmra.mrb[14].mxu0 %v1676_v58  ;;  %1822 = vmatmul.mubr.f32.vlgmr.msra.gmra.mrb[18].mxu1 %v1676_v58 }
 0x73d   :  { %2043 = vmatprep.mubr.msk.f32.mxu0 %vm2662_vm1, %v2659_v7  ;;  %2576 = vmatpush3.bf16.msra.mxu0 %v2575_v19  ;;  %v1896_v7 = vld [vmem:[%s3405_s4 + $0x38] sm:$0xff] }
 0x73e   :  { %2577 = vmatprep.subr.bf16.mxu0 %v2661_v16  ;;  %v2584_v24 = vpack.c.bf16 %v1896_v7, %v1895_v32 }
 0x741   :  { %2579 = vmatpush3.bf16.msra.mxu0 %v2578_v23 }
 0x742   :  { %2580 = vmatprep.subr.bf16.mxu0 %v2661_v16 }
 0x745   :  { %2582 = vmatpush3.bf16.msra.mxu0 %v2581_v29 }
 0x746   :  { %2583 = vmatprep.subr.bf16.mxu0 %v2661_v16 }
 0x749   :  { %2585 = vmatpush3.bf16.msra.mxu0 %v2584_v24 }
 0x74a   :  { %2586 = vmatprep.subr.bf16.mxu0 %v2661_v16 }
 0x74d   :  { %2588 = vmatpush3.bf16.msra.mxu0 %v2587_v30 }
 0x74e   :  { %2589 = vmatprep.subr.bf16.mxu0 %v2661_v16 }
 0x751   :  { %2591 = vmatpush3.bf16.msra.mxu0 %v2590_v36 }
 0x752   :  { %2592 = vmatprep.subr.bf16.mxu0 %v2661_v16 }
 0x755   :  { %2594 = vmatpush3.bf16.msra.mxu0 %v2593_v49 }
 0x756   :  { %2595 = vmatprep.subr.bf16.mxu0 %v2661_v16 }
 0x759   :  { %2597 = vmatpush3.bf16.msra.mxu0 %v2596_v45 }
 0x80f   :  { %v1752_v52 = vpop.f32.mrb[14].mxu0  ;;  %v1823_v54 = vpop.f32.mrb[18].mxu1 }
 0x810   :  { %v1754_v60 = vpop.f32.mrb[15].mxu0  ;;  %v1825_v62 = vpop.f32.mrb[19].mxu1 }
 0x811   :  { %v1832_v63 = vcombine.low %v1752_v52, %v1754_v60  ;;  %v1833_v2 = vcombine.low %v1823_v54, %v1825_v62 }
 0x813   :  { %v1840_v6 = vrot.slane %v1832_v63, %v3085_v61  ;;  %v1847_v9 = vrot.slane %v1833_v2, %v3085_v61 }
 0x815   :  { %v1848_v11 = vcombine.low %v1840_v6, %v1847_v9 }
 0x817   :  { %v1855_v15 = vrot.slane %v1848_v11, %v3085_v61 }
 0x819   :  { %v1857_v26 = vadd.f32 %v1855_v15, %v1685_v18 }
 0x81b   :  { %2631 = vtanh.f32 %v1857_v26 }
 0x825   :  { %v2632_v33 = vpop.eup %2631 }
 0x826   :  { %v1859_v38 = vmul.f32 0.5, %v2632_v33  ;;  %v1862_v43 = vrot.slane %v2632_v33, 1  ;;  %v1871_v59 = vrot.slane %v2632_v33, 2  ;;  %v1866_v8 = vrot.slane %v2632_v33, 3 }
 0x828   :  { %v1860_v51 = vadd.f32 0.5, %v1859_v38  ;;  %v1864_v53 = vmul.f32 0.5, %v1862_v43  ;;  %v1868_v13 = vmul.f32 0.5, %v1866_v8 }
 0x82a   :  { %v1865_v56 = vadd.f32 0.5, %v1864_v53  ;;  %v1873_v1 = vmul.f32 %v1871_v59, %v1860_v51  ;;  %v1869_v14 = vadd.f32 0.5, %v1868_v13 }
 0x82c   :  { %v1870_v0 = vmul.f32 %v1865_v56, %v3330_v42 }
 0x82e   :  { %v1874_v4 = vadd.f32 %v1873_v1, %v1870_v0 }
 0x830   :  { %2633 = vtanh.f32 %v1874_v4  ;;  %1885 = vst [vmem:[#allocation3] sm:$0x1] %v1874_v4 }
 0x83a   :  { %v2634_v61 = vpop.eup %2633 }
 0x83b   :  { %v1876_v17 = vmul.f32 %v2634_v61, %v1869_v14 }
 0x83d   :  { %1884 = vst [vmem:[#allocation2] sm:$0x1] %v1876_v17  ;;  %2044 = vmatmul.mubr.f32.vlgmr.msra.gmra.mrb[16].mxu0 %v1876_v17 }
 0x910   :  { %v1972_v27 = vpop.f32.mrb[16].mxu0 }
 0x911   :  { %v1973_v28 = vadd.f32 %v1972_v27, %v1905_v20  ;;  %v2045_v31 = vpop.f32.mrb[17].mxu0 }
 0x913   :  { %1977 = vst.msk [vmem:[#allocation5] sm:$0x1] %vm1976_vm2, %v1973_v28 }
 0x914   :  { %2646 = shalt.err (!%p2643_p4)
}
 0x915   :  { %s2647_s5 = scalar_lea.hbm %s3407_s6, 16 }
 0x916   :  { %p2648_p5 = scmp.ne.s32.totalorder %s3407_s6, %s2647_s5  ;;  %p2651_p6 = scmp.lt.u32.totalorder %s2647_s5, %s3407_s6 }
 0x918   :  { %p2653_p7 = pnand %p2651_p6, %p2648_p5 }
 0x91a   :  { %2656 = shalt.err (!%p2653_p7)
}
 0x91b   :  { %1987 = dma.vmem_to_hbm [thread:$0]  %s1985_s11, 16, %s3407_s6, [#allocation6]  }
 0x91c   :  { %2657 = dma.done.wait [#allocation6], 16  }
 0x91d   :  { %2658 = vsyncadd [#allocation6], 4294967280 }
 0x91e   :  { %1991 = vsyncpa [#allocation6], 1 }

</bundles_post_ra>
